<compile_context>
chip_gen: v6e
topology: v6e:2x2x1
jax: 0.10.0
libtpu: 0.0.40
codegen_flags: <defaults>
</compile_context>

<pallas_src>
import functools

import jax
import jax.numpy as jnp
from jax.experimental import pallas as pl
from jax.experimental.pallas import tpu as pltpu


EMBED_DIM = 32
CHANNELS = (4, 32, 64, 128, 256)
BN_EPS = 1e-5
MAX_TILE_N = 512                      # lane-dim rows per grid step
VMEM_LIMIT_BYTES = 32 * 1024 * 1024   # safe on v5e/v6e/v7x; tiles stay well under


def _choose_tile_n(n, max_tile=MAX_TILE_N):
    """Full N if it is small, else the largest multiple of 128 that divides N."""
    if n <= max_tile:
        return n
    for t in range(max_tile, 0, -128):
        if n % t == 0:
            return t
    return n  # fallback: one full-length tile (always correct, just bigger)


def _fused_kernel(compute_dtype, inv_n,
                  x_ref,
                  w1, b1, w2, b2, w3, b3, w4, b4,
                  w5, b5, w6, b6,
                  out_ref, acc_ref):
    """One (batch, N-tile) grid step of the fused forward pass.

    x_ref:   (1, 4, TILE_N) input block (NCW layout)
    w_i:     (C_out, C_in) BN-folded conv weights, b_i: (C_out, 1)
    w5/w6:   fc weights (256,128)/(128,EMB); b5/b6: (1,128)/(1,EMB)
    out_ref: (1, 1, EMB) output block for this batch element
    acc_ref: (1, 256) f32 running sum over N (scratch, carried over the N axis)
    """
    n_idx = pl.program_id(1)

    @pl.when(n_idx == 0)
    def _init():
        acc_ref[...] = jnp.zeros_like(acc_ref)

    def conv_relu(h, w_ref, b_ref):
        # 1x1 Conv1d == (C_out, C_in) @ (C_in, TILE_N); f32 accumulation on MXU.
        y = jnp.dot(w_ref[...], h.astype(compute_dtype),
                    preferred_element_type=jnp.float32) + b_ref[...]
        return jnp.maximum(y, 0.0)

    h = x_ref[0]                       # (4, TILE_N)
    h = conv_relu(h, w1, b1)           # (32, TILE_N)
    h = conv_relu(h, w2, b2)           # (64, TILE_N)   (BN1 folded in)
    h = conv_relu(h, w3, b3)           # (128, TILE_N)  (BN2 folded in)
    h = conv_relu(h, w4, b4)           # (256, TILE_N)  (BN3 folded in)

    # Partial sum over this tile's N positions (AdaptiveAvgPool1d numerator).
    acc_ref[...] += jnp.sum(h, axis=1)[None, :]

    @pl.when(n_idx == pl.num_programs(1) - 1)
    def _epilogue():
        pooled = acc_ref[...] * inv_n                      # (1, 256); BN4 folded into fc1
        z = jnp.dot(pooled.astype(compute_dtype), w5[...],
                    preferred_element_type=jnp.float32) + b5[...]
        z = jnp.maximum(z, 0.0)                            # ReLU; Dropout is identity (eval)
        o = jnp.dot(z.astype(compute_dtype), w6[...],
                    preferred_element_type=jnp.float32) + b6[...]
        out_ref[...] = o.reshape(out_ref.shape).astype(out_ref.dtype)


def dynamic_obstacle_embedding(x_ncw, params, *, compute_dtype=jnp.float32):
    """x_ncw: (B, 4, N) float32 in PyTorch NCW layout -> (B, EMBED_DIM)."""
    B, C, N = x_ncw.shape
    assert C == CHANNELS[0]
    tile_n = _choose_tile_n(N)
    num_n = N // tile_n

    # ---- Fold eval-mode BatchNorm (Conv->ReLU->BN ordering) into the NEXT layer.
    conv_ws, conv_bs = [], []
    s_prev = t_prev = None
    for i in range(4):
        w, b, gamma, beta, mean, var = params[f"conv{i+1}"]   # w: (C_out, C_in)
        s = gamma / jnp.sqrt(var + BN_EPS)
        t = beta - mean * s
        if s_prev is not None:
            b = b + w @ t_prev            # bias fold uses the un-scaled weight
            w = w * s_prev[None, :]
        conv_ws.append(w.astype(compute_dtype))
        conv_bs.append(b.astype(jnp.float32)[:, None])        # (C_out, 1)
        s_prev, t_prev = s, t

    w5, b5 = params["fc1"]                 # (256, 128), (128,)
    w6, b6 = params["fc2"]                 # (128, EMB), (EMB,)
    # conv4's BN folds exactly through the (linear) mean pool into fc1.
    b5f = (b5 + t_prev @ w5).astype(jnp.float32)[None, :]     # (1, 128)
    w5f = (s_prev[:, None] * w5).astype(compute_dtype)        # (256, 128)
    w6c = w6.astype(compute_dtype)                            # (128, EMB)
    b6c = b6.astype(jnp.float32)[None, :]                     # (1, EMB)

    inputs = [x_ncw]
    for w, b in zip(conv_ws, conv_bs):
        inputs += [w, b]
    inputs += [w5f, b5f, w6c, b6c]

    in_specs = [pl.BlockSpec((1, C, tile_n), lambda b, n: (b, 0, n))]
    for arr in inputs[1:]:
        # Full-array blocks with a constant index map: DMA'd once, VMEM-resident.
        in_specs.append(
            pl.BlockSpec(arr.shape, lambda b, n, _r=arr.ndim: (0,) * _r))

    out_specs = pl.BlockSpec((1, 1, EMBED_DIM), lambda b, n: (b, 0, 0))

    flops = (2 * B * N * sum(CHANNELS[i] * CHANNELS[i + 1] for i in range(4))
             + 2 * B * (CHANNELS[-1] * 128 + 128 * EMBED_DIM))
    bytes_accessed = (x_ncw.size * x_ncw.dtype.itemsize
                      + sum(int(a.size) * a.dtype.itemsize for a in inputs[1:])
                      + B * EMBED_DIM * 4)

    out = pl.pallas_call(
        functools.partial(_fused_kernel, compute_dtype, 1.0 / N),
        out_shape=jax.ShapeDtypeStruct((B, 1, EMBED_DIM), jnp.float32),
        grid_spec=pltpu.PrefetchScalarGridSpec(
            num_scalar_prefetch=0,
            grid=(B, num_n),
            in_specs=in_specs,
            out_specs=out_specs,
            scratch_shapes=[pltpu.VMEM((1, CHANNELS[-1]), jnp.float32)]),
        compiler_params=pltpu.CompilerParams(
            dimension_semantics=("parallel", "arbitrary"),
            vmem_limit_bytes=VMEM_LIMIT_BYTES),
        cost_estimate=pl.CostEstimate(
            flops=flops, transcendentals=0, bytes_accessed=bytes_accessed),
    )(*inputs)
    return out.reshape(B, EMBED_DIM)


def init_params(key):
    """Deterministic synthetic parameters matching the PyTorch module shapes."""
    params = {}
    keys = jax.random.split(key, 4 * 6 + 4)
    ki = iter(keys)
    for i in range(4):
        cin, cout = CHANNELS[i], CHANNELS[i + 1]
        params[f"conv{i+1}"] = (
            jax.random.normal(next(ki), (cout, cin), jnp.float32) * 0.1,    # Conv1d weight (k=1)
            jax.random.normal(next(ki), (cout,), jnp.float32) * 0.1,        # Conv1d bias
            1.0 + 0.1 * jax.random.normal(next(ki), (cout,), jnp.float32),  # BN gamma
            0.1 * jax.random.normal(next(ki), (cout,), jnp.float32),        # BN beta
            0.1 * jax.random.normal(next(ki), (cout,), jnp.float32),        # BN running_mean
            0.5 + jax.random.uniform(next(ki), (cout,), jnp.float32),       # BN running_var
        )
    params["fc1"] = (
        jax.random.normal(next(ki), (CHANNELS[-1], 128), jnp.float32) * 0.05,
        jax.random.normal(next(ki), (128,), jnp.float32) * 0.05,
    )
    params["fc2"] = (
        jax.random.normal(next(ki), (128, EMBED_DIM), jnp.float32) * 0.05,
        jax.random.normal(next(ki), (EMBED_DIM,), jnp.float32) * 0.05,
    )
    return params


def reference_forward(x_ncw, params):
    """Pure-JAX reference mirroring the PyTorch module (eval mode)."""
    h = x_ncw                                                  # (B, 4, N)
    for i in range(4):
        w, b, gamma, beta, mean, var = params[f"conv{i+1}"]
        h = jnp.einsum("oi,bin->bon", w, h) + b[None, :, None]  # Conv1d(k=1)
        h = jnp.maximum(h, 0.0)                                  # ReLU
        s = gamma / jnp.sqrt(var + BN_EPS)
        h = (h - mean[None, :, None]) * s[None, :, None] + beta[None, :, None]
    pooled = h.mean(axis=2)                                    # AdaptiveAvgPool1d(1) + Flatten
    w5, b5 = params["fc1"]
    w6, b6 = params["fc2"]
    z = jnp.maximum(pooled @ w5 + b5, 0.0)                     # Linear + ReLU (+ Dropout id)
    return z @ w6 + b6


if __name__ == "__main__":
    key = jax.random.PRNGKey(0)
    kx, kp = jax.random.split(key)

    B, C, N = 2, 4, 16
    x = jax.random.normal(kx, (B, C, N), jnp.float32)          # PyTorch NCW input
    params = init_params(kp)

    out = dynamic_obstacle_embedding(x, params)
    out = jax.block_until_ready(out)

    ref = reference_forward(x, params)
    assert out.shape == (B, EMBED_DIM)
    assert jnp.allclose(out, ref, atol=1e-4, rtol=1e-4)

    print("KERNEL_OK")
</pallas_src>

<mosaic_0001>
module attributes {stable_mosaic.version = 11 : i64} {
  func.func @_fused_kernel(%arg0: i32, %arg1: i32, %arg2: memref<1x4x16xf32, #tpu.memory_space<vmem>>, %arg3: memref<32x4xf32, #tpu.memory_space<vmem>>, %arg4: memref<32x1xf32, #tpu.memory_space<vmem>>, %arg5: memref<64x32xf32, #tpu.memory_space<vmem>>, %arg6: memref<64x1xf32, #tpu.memory_space<vmem>>, %arg7: memref<128x64xf32, #tpu.memory_space<vmem>>, %arg8: memref<128x1xf32, #tpu.memory_space<vmem>>, %arg9: memref<256x128xf32, #tpu.memory_space<vmem>>, %arg10: memref<256x1xf32, #tpu.memory_space<vmem>>, %arg11: memref<256x128xf32, #tpu.memory_space<vmem>>, %arg12: memref<1x128xf32, #tpu.memory_space<vmem>>, %arg13: memref<128x32xf32, #tpu.memory_space<vmem>>, %arg14: memref<1x32xf32, #tpu.memory_space<vmem>>, %arg15: memref<1x1x32xf32, #tpu.memory_space<vmem>>, %arg16: memref<1x256xf32, #tpu.memory_space<vmem>>) attributes {dimension_semantics = [#tpu.dimension_semantics<parallel>, #tpu.dimension_semantics<arbitrary>], iteration_bounds = array<i64: 2, 1>, scalar_prefetch = 0 : i64, scratch_operands = 1 : i64, tpu.core_type = #tpu.core_type<tc>, window_params = [{transform_indices = @transform_0, window_bounds = array<i64: 1, 4, 16>}, {pipeline_mode = #tpu.pipeline_mode<synchronous>, transform_indices = @transform_1, window_bounds = array<i64: 32, 4>}, {pipeline_mode = #tpu.pipeline_mode<synchronous>, transform_indices = @transform_2, window_bounds = array<i64: 32, 1>}, {pipeline_mode = #tpu.pipeline_mode<synchronous>, transform_indices = @transform_3, window_bounds = array<i64: 64, 32>}, {pipeline_mode = #tpu.pipeline_mode<synchronous>, transform_indices = @transform_4, window_bounds = array<i64: 64, 1>}, {pipeline_mode = #tpu.pipeline_mode<synchronous>, transform_indices = @transform_5, window_bounds = array<i64: 128, 64>}, {pipeline_mode = #tpu.pipeline_mode<synchronous>, transform_indices = @transform_6, window_bounds = array<i64: 128, 1>}, {pipeline_mode = #tpu.pipeline_mode<synchronous>, transform_indices = @transform_7, window_bounds = array<i64: 256, 128>}, {pipeline_mode = #tpu.pipeline_mode<synchronous>, transform_indices = @transform_8, window_bounds = array<i64: 256, 1>}, {pipeline_mode = #tpu.pipeline_mode<synchronous>, transform_indices = @transform_9, window_bounds = array<i64: 256, 128>}, {pipeline_mode = #tpu.pipeline_mode<synchronous>, transform_indices = @transform_10, window_bounds = array<i64: 1, 128>}, {pipeline_mode = #tpu.pipeline_mode<synchronous>, transform_indices = @transform_11, window_bounds = array<i64: 128, 32>}, {pipeline_mode = #tpu.pipeline_mode<synchronous>, transform_indices = @transform_12, window_bounds = array<i64: 1, 32>}, {transform_indices = @transform_13, window_bounds = array<i64: 1, 1, 32>}]} {
    %c0_i32 = arith.constant 0 : i32
    %0 = arith.cmpi eq, %arg1, %c0_i32 : i32
    %1 = arith.extui %0 : i1 to i32
    %c0_i32_0 = arith.constant 0 : i32
    %2 = arith.cmpi ne, %1, %c0_i32_0 : i32
    scf.if %2 {
      %cst_33 = arith.constant 0.000000e+00 : f32
      %41 = vector.broadcast %cst_33 : f32 to vector<1x256xf32>
      %c0_34 = arith.constant 0 : index
      %c0_35 = arith.constant 0 : index
      %42 = vector.load %arg16[%c0_34, %c0_35] : memref<1x256xf32, #tpu.memory_space<vmem>>, vector<1x256xf32>
      tpu.vector_store %arg16[%c0_34, %c0_35], %41 {strides = array<i32>} : memref<1x256xf32, #tpu.memory_space<vmem>>, vector<1x256xf32>,
    } else {
    }
    %c0 = arith.constant 0 : index
    %c0_1 = arith.constant 0 : index
    %c0_2 = arith.constant 0 : index
    %3 = vector.load %arg2[%c0, %c0_1, %c0_2] : memref<1x4x16xf32, #tpu.memory_space<vmem>>, vector<1x4x16xf32>
    %4 = vector.shape_cast %3 : vector<1x4x16xf32> to vector<4x16xf32>
    %c0_3 = arith.constant 0 : index
    %c0_4 = arith.constant 0 : index
    %5 = vector.load %arg3[%c0_3, %c0_4] : memref<32x4xf32, #tpu.memory_space<vmem>>, vector<32x4xf32>
    %cst = arith.constant dense<0.000000e+00> : vector<32x16xf32>
    %6 = tpu.matmul %5, %4, %cst {dimension_numbers = #tpu.dot_dimension_numbers<[1], [0], [0], [1], [0, 0, 1, 1], [], []>} : vector<32x4xf32>, vector<4x16xf32>, vector<32x16xf32> -> vector<32x16xf32>
    %c0_5 = arith.constant 0 : index
    %c0_6 = arith.constant 0 : index
    %7 = vector.load %arg4[%c0_5, %c0_6] : memref<32x1xf32, #tpu.memory_space<vmem>>, vector<32x1xf32>
    %8 = vector.broadcast %7 : vector<32x1xf32> to vector<32x16xf32>
    %9 = arith.addf %6, %8 : vector<32x16xf32>
    %cst_7 = arith.constant 0.000000e+00 : f32
    %10 = vector.broadcast %cst_7 : f32 to vector<32x16xf32>
    %11 = arith.maximumf %9, %10 : vector<32x16xf32>
    %c0_8 = arith.constant 0 : index
    %c0_9 = arith.constant 0 : index
    %12 = vector.load %arg5[%c0_8, %c0_9] : memref<64x32xf32, #tpu.memory_space<vmem>>, vector<64x32xf32>
    %cst_10 = arith.constant dense<0.000000e+00> : vector<64x16xf32>
    %13 = tpu.matmul %12, %11, %cst_10 {dimension_numbers = #tpu.dot_dimension_numbers<[1], [0], [0], [1], [0, 0, 1, 1], [], []>} : vector<64x32xf32>, vector<32x16xf32>, vector<64x16xf32> -> vector<64x16xf32>
    %c0_11 = arith.constant 0 : index
    %c0_12 = arith.constant 0 : index
    %14 = vector.load %arg6[%c0_11, %c0_12] : memref<64x1xf32, #tpu.memory_space<vmem>>, vector<64x1xf32>
    %15 = vector.broadcast %14 : vector<64x1xf32> to vector<64x16xf32>
    %16 = arith.addf %13, %15 : vector<64x16xf32>
    %cst_13 = arith.constant 0.000000e+00 : f32
    %17 = vector.broadcast %cst_13 : f32 to vector<64x16xf32>
    %18 = arith.maximumf %16, %17 : vector<64x16xf32>
    %c0_14 = arith.constant 0 : index
    %c0_15 = arith.constant 0 : index
    %19 = vector.load %arg7[%c0_14, %c0_15] : memref<128x64xf32, #tpu.memory_space<vmem>>, vector<128x64xf32>
    %cst_16 = arith.constant dense<0.000000e+00> : vector<128x16xf32>
    %20 = tpu.matmul %19, %18, %cst_16 {dimension_numbers = #tpu.dot_dimension_numbers<[1], [0], [0], [1], [0, 0, 1, 1], [], []>} : vector<128x64xf32>, vector<64x16xf32>, vector<128x16xf32> -> vector<128x16xf32>
    %c0_17 = arith.constant 0 : index
    %c0_18 = arith.constant 0 : index
    %21 = vector.load %arg8[%c0_17, %c0_18] : memref<128x1xf32, #tpu.memory_space<vmem>>, vector<128x1xf32>
    %22 = vector.broadcast %21 : vector<128x1xf32> to vector<128x16xf32>
    %23 = arith.addf %20, %22 : vector<128x16xf32>
    %cst_19 = arith.constant 0.000000e+00 : f32
    %24 = vector.broadcast %cst_19 : f32 to vector<128x16xf32>
    %25 = arith.maximumf %23, %24 : vector<128x16xf32>
    %c0_20 = arith.constant 0 : index
    %c0_21 = arith.constant 0 : index
    %26 = vector.load %arg9[%c0_20, %c0_21] : memref<256x128xf32, #tpu.memory_space<vmem>>, vector<256x128xf32>
    %cst_22 = arith.constant dense<0.000000e+00> : vector<256x16xf32>
    %27 = tpu.matmul %26, %25, %cst_22 {dimension_numbers = #tpu.dot_dimension_numbers<[1], [0], [0], [1], [0, 0, 1, 1], [], []>} : vector<256x128xf32>, vector<128x16xf32>, vector<256x16xf32> -> vector<256x16xf32>
    %c0_23 = arith.constant 0 : index
    %c0_24 = arith.constant 0 : index
    %28 = vector.load %arg10[%c0_23, %c0_24] : memref<256x1xf32, #tpu.memory_space<vmem>>, vector<256x1xf32>
    %29 = vector.broadcast %28 : vector<256x1xf32> to vector<256x16xf32>
    %30 = arith.addf %27, %29 : vector<256x16xf32>
    %cst_25 = arith.constant 0.000000e+00 : f32
    %31 = vector.broadcast %cst_25 : f32 to vector<256x16xf32>
    %32 = arith.maximumf %30, %31 : vector<256x16xf32>
    %c0_26 = arith.constant 0 : index
    %c0_27 = arith.constant 0 : index
    %33 = vector.load %arg16[%c0_26, %c0_27] : memref<1x256xf32, #tpu.memory_space<vmem>>, vector<1x256xf32>
    %cst_28 = arith.constant dense<0.000000e+00> : vector<256xf32>
    %34 = vector.multi_reduction <add>, %32, %cst_28 [1] : vector<256x16xf32> to vector<256xf32>
    %35 = vector.shape_cast %34 : vector<256xf32> to vector<1x256xf32>
    %36 = arith.addf %33, %35 : vector<1x256xf32>
    %c0_29 = arith.constant 0 : index
    %c0_30 = arith.constant 0 : index
    %37 = vector.load %arg16[%c0_29, %c0_30] : memref<1x256xf32, #tpu.memory_space<vmem>>, vector<1x256xf32>
    tpu.vector_store %arg16[%c0_29, %c0_30], %36 {strides = array<i32>} : memref<1x256xf32, #tpu.memory_space<vmem>>, vector<1x256xf32>,
    %c0_i32_31 = arith.constant 0 : i32
    %38 = arith.cmpi eq, %arg1, %c0_i32_31 : i32
    %39 = arith.extui %38 : i1 to i32
    %c0_i32_32 = arith.constant 0 : i32
    %40 = arith.cmpi ne, %39, %c0_i32_32 : i32
    scf.if %40 {
      %c0_33 = arith.constant 0 : index
      %c0_34 = arith.constant 0 : index
      %41 = vector.load %arg16[%c0_33, %c0_34] : memref<1x256xf32, #tpu.memory_space<vmem>>, vector<1x256xf32>
      %cst_35 = arith.constant 6.250000e-02 : f32
      %42 = vector.broadcast %cst_35 : f32 to vector<1x256xf32>
      %43 = arith.mulf %41, %42 : vector<1x256xf32>
      %c0_36 = arith.constant 0 : index
      %c0_37 = arith.constant 0 : index
      %44 = vector.load %arg11[%c0_36, %c0_37] : memref<256x128xf32, #tpu.memory_space<vmem>>, vector<256x128xf32>
      %cst_38 = arith.constant dense<0.000000e+00> : vector<1x128xf32>
      %45 = tpu.matmul %43, %44, %cst_38 {dimension_numbers = #tpu.dot_dimension_numbers<[1], [0], [0], [1], [0, 0, 1, 1], [], []>} : vector<1x256xf32>, vector<256x128xf32>, vector<1x128xf32> -> vector<1x128xf32>
      %c0_39 = arith.constant 0 : index
      %c0_40 = arith.constant 0 : index
      %46 = vector.load %arg12[%c0_39, %c0_40] : memref<1x128xf32, #tpu.memory_space<vmem>>, vector<1x128xf32>
      %47 = arith.addf %45, %46 : vector<1x128xf32>
      %cst_41 = arith.constant 0.000000e+00 : f32
      %48 = vector.broadcast %cst_41 : f32 to vector<1x128xf32>
      %49 = arith.maximumf %47, %48 : vector<1x128xf32>
      %c0_42 = arith.constant 0 : index
      %c0_43 = arith.constant 0 : index
      %50 = vector.load %arg13[%c0_42, %c0_43] : memref<128x32xf32, #tpu.memory_space<vmem>>, vector<128x32xf32>
      %cst_44 = arith.constant dense<0.000000e+00> : vector<1x32xf32>
      %51 = tpu.matmul %49, %50, %cst_44 {dimension_numbers = #tpu.dot_dimension_numbers<[1], [0], [0], [1], [0, 0, 1, 1], [], []>} : vector<1x128xf32>, vector<128x32xf32>, vector<1x32xf32> -> vector<1x32xf32>
      %c0_45 = arith.constant 0 : index
      %c0_46 = arith.constant 0 : index
      %52 = vector.load %arg14[%c0_45, %c0_46] : memref<1x32xf32, #tpu.memory_space<vmem>>, vector<1x32xf32>
      %53 = arith.addf %51, %52 : vector<1x32xf32>
      %54 = vector.shape_cast %53 : vector<1x32xf32> to vector<1x1x32xf32>
      %c0_47 = arith.constant 0 : index
      %c0_48 = arith.constant 0 : index
      %c0_49 = arith.constant 0 : index
      %55 = vector.load %arg15[%c0_47, %c0_48, %c0_49] : memref<1x1x32xf32, #tpu.memory_space<vmem>>, vector<1x1x32xf32>
      tpu.vector_store %arg15[%c0_47, %c0_48, %c0_49], %54 {strides = array<i32>} : memref<1x1x32xf32, #tpu.memory_space<vmem>>, vector<1x1x32xf32>,
    } else {
    }
    return
  }
  func.func @transform_0(%arg0: i32, %arg1: i32) -> (i32, i32, i32) {
    %c0_i32 = arith.constant 0 : i32
    %c0_i32_0 = arith.constant 0 : i32
    return %arg0, %c0_i32, %arg1 : i32, i32, i32
  }
  func.func @transform_1(%arg0: i32, %arg1: i32) -> (i32, i32) {
    %c0_i32 = arith.constant 0 : i32
    %c0_i32_0 = arith.constant 0 : i32
    %c0_i32_1 = arith.constant 0 : i32
    return %c0_i32, %c0_i32_0 : i32, i32
  }
  func.func @transform_2(%arg0: i32, %arg1: i32) -> (i32, i32) {
    %c0_i32 = arith.constant 0 : i32
    %c0_i32_0 = arith.constant 0 : i32
    %c0_i32_1 = arith.constant 0 : i32
    return %c0_i32, %c0_i32_0 : i32, i32
  }
  func.func @transform_3(%arg0: i32, %arg1: i32) -> (i32, i32) {
    %c0_i32 = arith.constant 0 : i32
    %c0_i32_0 = arith.constant 0 : i32
    %c0_i32_1 = arith.constant 0 : i32
    return %c0_i32, %c0_i32_0 : i32, i32
  }
  func.func @transform_4(%arg0: i32, %arg1: i32) -> (i32, i32) {
    %c0_i32 = arith.constant 0 : i32
    %c0_i32_0 = arith.constant 0 : i32
    %c0_i32_1 = arith.constant 0 : i32
    return %c0_i32, %c0_i32_0 : i32, i32
  }
  func.func @transform_5(%arg0: i32, %arg1: i32) -> (i32, i32) {
    %c0_i32 = arith.constant 0 : i32
    %c0_i32_0 = arith.constant 0 : i32
    %c0_i32_1 = arith.constant 0 : i32
    return %c0_i32, %c0_i32_0 : i32, i32
  }
  func.func @transform_6(%arg0: i32, %arg1: i32) -> (i32, i32) {
    %c0_i32 = arith.constant 0 : i32
    %c0_i32_0 = arith.constant 0 : i32
    %c0_i32_1 = arith.constant 0 : i32
    return %c0_i32, %c0_i32_0 : i32, i32
  }
  func.func @transform_7(%arg0: i32, %arg1: i32) -> (i32, i32) {
    %c0_i32 = arith.constant 0 : i32
    %c0_i32_0 = arith.constant 0 : i32
    %c0_i32_1 = arith.constant 0 : i32
    return %c0_i32, %c0_i32_0 : i32, i32
  }
  func.func @transform_8(%arg0: i32, %arg1: i32) -> (i32, i32) {
    %c0_i32 = arith.constant 0 : i32
    %c0_i32_0 = arith.constant 0 : i32
    %c0_i32_1 = arith.constant 0 : i32
    return %c0_i32, %c0_i32_0 : i32, i32
  }
  func.func @transform_9(%arg0: i32, %arg1: i32) -> (i32, i32) {
    %c0_i32 = arith.constant 0 : i32
    %c0_i32_0 = arith.constant 0 : i32
    %c0_i32_1 = arith.constant 0 : i32
    return %c0_i32, %c0_i32_0 : i32, i32
  }
  func.func @transform_10(%arg0: i32, %arg1: i32) -> (i32, i32) {
    %c0_i32 = arith.constant 0 : i32
    %c0_i32_0 = arith.constant 0 : i32
    %c0_i32_1 = arith.constant 0 : i32
    return %c0_i32, %c0_i32_0 : i32, i32
  }
  func.func @transform_11(%arg0: i32, %arg1: i32) -> (i32, i32) {
    %c0_i32 = arith.constant 0 : i32
    %c0_i32_0 = arith.constant 0 : i32
    %c0_i32_1 = arith.constant 0 : i32
    return %c0_i32, %c0_i32_0 : i32, i32
  }
  func.func @transform_12(%arg0: i32, %arg1: i32) -> (i32, i32) {
    %c0_i32 = arith.constant 0 : i32
    %c0_i32_0 = arith.constant 0 : i32
    %c0_i32_1 = arith.constant 0 : i32
    return %c0_i32, %c0_i32_0 : i32, i32
  }
  func.func @transform_13(%arg0: i32, %arg1: i32) -> (i32, i32, i32) {
    %c0_i32 = arith.constant 0 : i32
    %c0_i32_0 = arith.constant 0 : i32
    %c0_i32_1 = arith.constant 0 : i32
    return %arg0, %c0_i32, %c0_i32_0 : i32, i32, i32
  }
}

</mosaic_0001>

<bundles_post_ra>
// kernel: tpu_custom_call.1
= control target key start
LH: loop header
LB: loop body
LE: loop exit
PB: predicated region body
PF: predicated region fallthrough
CT: control target
= control target key end

     0   :  { %18 = vsyncpa [#allocation4], 0  ;;  %s6897_s0 = inlined_call_operand.vmem [shape: f32[2,4,16], index: 0, kind: input, shape index: {}]   ;;  %s6898_s1 = inlined_call_operand.vmem [shape: f32[32,4], index: 1, kind: input, shape index: {}]   ;;  %s6899_s2 = inlined_call_operand.vmem [shape: f32[32,1], index: 2, kind: input, shape index: {}]   ;;  %s6900_s3 = inlined_call_operand.vmem [shape: f32[64,32], index: 3, kind: input, shape index: {}]   ;;  %s6901_s4 = inlined_call_operand.vmem [shape: f32[64,1], index: 4, kind: input, shape index: {}]   ;;  %s6902_s5 = inlined_call_operand.vmem [shape: f32[128,64], index: 5, kind: input, shape index: {}]   ;;  %s6903_s6 = inlined_call_operand.vmem [shape: f32[128,1], index: 6, kind: input, shape index: {}]   ;;  %s6904_s7 = inlined_call_operand.vmem [shape: f32[256,128], index: 7, kind: input, shape index: {}]   ;;  %s6905_s8 = inlined_call_operand.vmem [shape: f32[256,1], index: 8, kind: input, shape index: {}]   ;;  %s6906_s9 = inlined_call_operand.vmem [shape: f32[256,128], index: 9, kind: input, shape index: {}]   ;;  %s6907_s10 = inlined_call_operand.vmem [shape: f32[1,128], index: 10, kind: input, shape index: {}]   ;;  %s6908_s11 = inlined_call_operand.vmem [shape: f32[128,32], index: 11, kind: input, shape index: {}]   ;;  %s6909_s12 = inlined_call_operand.vmem [shape: f32[1,32], index: 12, kind: input, shape index: {}]   ;;  %s6910_s13 = inlined_call_operand.hbm [shape: f32[2,1,32], index: 13, kind: output, shape index: {}]  }
   0x1   :  { %20 = vsyncpa [#allocation4 + $0x1], 0  ;;  %s5493_s25 = smov 0   ;;  %s5495_s26 = smov 0  }
   0x2   :  { %s5497_s27 = smov 0   ;;  %s5499_s28 = smov 0  }
   0x3   :  { %s5501_s29 = smov 0   ;;  %s5503_s30 = smov 0  }
   0x4 LB: > { %6914 = sst [smem:[#allocation6_spill]] %s5404_s27  ;;  %s4917_s14 = sadd.s32 4294967295, %s5416_s30   ;;  %s5416_s30 = sphi %s5503_s30, %s26_s30   ;;  %s5412_s29 = sphi %s5501_s29, %s6925_s29   ;;  %s5408_s28 = sphi %s5499_s28, %s6924_s28   ;;  %s5404_s27 = sphi %s5497_s27, %s6923_s27   ;;  %s5400_s26 = sphi %s5495_s26, %s6927_s26   ;;  %s5396_s25 = sphi %s5493_s25, %s6926_s25  }
   0x5   : > { %6915 = sst [smem:[#allocation7_spill]] %s5412_s29  ;;  %s4918_s15 = sadd.s32 4294967294, %s5416_s30  }
   0x6   : > { %s38_s16 = sadd.s32 1, %s5412_s29  ;;  %s325_s17 = sadd.s32 1, %s5404_s27 }
   0x7   : > { %p40_p0 = scmp.ge.s32.totalorder %s38_s16, 2  ;;  %p335_p1 = scmp.ne.s32.totalorder %s5404_s27, %s5400_s26 }
   0x8   : > { %p336_p2 = scmp.eq.s32.totalorder %s4917_s14, 1  ;;  %p341_p3 = scmp.ne.s32.totalorder %s5400_s26, %s5396_s25 }
   0x9   : > { %s6929_s16 = smov (%p40_p0, %s38_s16), 0  ;;  %p342_p5 = scmp.eq.s32.totalorder %s4918_s15, 1 }
   0xa   : > { %6916 = sst [smem:[#allocation8_spill]] %s6929_s16  ;;  %p5533_p4 = por %p336_p2, %p335_p1 }
   0xb   : > { %s322_s19 = ssub.s32 %s5412_s29, %s6929_s16  ;;  %p4921_p6 = scmp.ge.s32.totalorder %s5416_s30, 1 }
   0xc   : > { %p323_p7 = scmp.eq.s32.totalorder %s322_s19, 0  ;;  %p5540_p8 = por %p342_p5, %p341_p3 }
   0xd   : > { %p406_p9 = scmp.lt.s32.totalorder %s5416_s30, 3 }
   0xe   : > { %s5546_s21 = scalar_select %p323_p7, %s5404_s27, %s325_s17  }
   0xf   : > { %p407_p10 = pnand %p4921_p6, %p406_p9 }
  0x10   : > { %6919 = sst [smem:[#allocation9_spill]] %s5546_s21  ;;  %p451_p11 = scmp.lt.s32.totalorder (!%p407_p10), %s5408_s28, 1 }
  0x11   : > { %410 = sbr.rel (%p407_p10) target bundleno = 1789 (0x6fd), region = 72  ;;  %s4952_s19 = sshll.u32 (!%p407_p10), %s5408_s28, 4 }
  0x16   : > { %v475_v0 = vld [vmem:[%s6899_s2 + $0x18] sm:$0xff]  ;;  %v473_v1 = vld [vmem:[%s6899_s2 + $0x8] sm:$0xff]  ;;  %v5418_v2 = vmov 0   ;;  %v468_v3 = vld [vmem:[%s6898_s1] sm:$0xff]  ;;  %vm496_vm0 = vcmask 31744   ;;  %s452_s17 = scalar_select %p451_p11, %s5408_s28, 1 }
  0x17   : > { %5339 = vset.pattern.permute.xlu1 %v5418_v2  ;;  %5338 = vset.pattern.permute.xlu0 %v5418_v2  ;;  %v474_v4 = vld [vmem:[%s6899_s2 + $0x10] sm:$0xff]  ;;  %v472_v5 = vld [vmem:[%s6899_s2] sm:$0xff]  ;;  %vm509_vm1 = vcmask 1043456   ;;  %v469_v7 = vld [vmem:[%s6898_s1 + $0x8] sm:$0xff]  ;;  %vm658_vm2 = vcmask 261120   ;;  %vm908_vm3 = vcmask 523264  }
  0x18   : > { %493 = vperm.xlu0 %5338, %v475_v0   ;;  %483 = vperm.xlu1 %5339, %v473_v1   ;;  %s4922_s24 = sshll.u32 %s452_s17, 2  ;;  %v617_v8 = vld [vmem:[%s6901_s4 + $0x38] sm:$0xff]  ;;  %v616_v9 = vld [vmem:[%s6901_s4 + $0x30] sm:$0xff]  ;;  %v615_v12 = vld [vmem:[%s6901_s4 + $0x28] sm:$0xff]  ;;  %vm1600_vm4 = vcmask 130048   ;;  %vm4428_vm6 = vcmask 130112   ;;  %s6857_s17 = scalar_lea.hbm %s6910_s13, %s4952_s19 }
  0x19   : > { %5098 = vmatprep.mubr.msk.f32.mxu0 %vm496_vm0, %v468_v3  ;;  %s457_s15 = scalar_lea.vmem %s6897_s0, %s4922_s24  ;;  %v470_v10 = vld [vmem:[%s6898_s1 + $0x10] sm:$0xff]  ;;  %v471_v11 = vld [vmem:[%s6898_s1 + $0x18] sm:$0xff]  ;;  %v614_v13 = vld [vmem:[%s6901_s4 + $0x20] sm:$0xff]  ;;  %vm4435_vm7 = vcmask 195712   ;;  %vm4442_vm8 = vcmask 261312   ;;  %vm4449_vm9 = vcmask 326912  }
  0x1a   : > { %v467_v6 = vld [vmem:[%s457_s15] sm:$0xf]  ;;  %v613_v14 = vld [vmem:[%s6901_s4 + $0x18] sm:$0xff]  ;;  %v612_v15 = vld [vmem:[%s6901_s4 + $0x10] sm:$0xff]  ;;  %vm4456_vm10 = vcmask 392512   ;;  %vm4463_vm11 = vcmask 458112  }
  0x1b   : > { %5096 = vmatprep.subr.msk.mxu0 %vm509_vm1, %v467_v6  ;;  %v611_v16 = vld [vmem:[%s6901_s4 + $0x8] sm:$0xff]  ;;  %v610_v17 = vld [vmem:[%s6901_s4] sm:$0xff]  ;;  %v827_v18 = vld [vmem:[%s6903_s6 + $0x78] sm:$0xff]  ;;  %vm4470_vm12 = vcmask 523712   ;;  %vm4477_vm13 = vcmask 589312   ;;  %vm4484_vm14 = vcmask 654912  }
  0x1c   : > { %488 = vperm.xlu0 %5338, %v474_v4   ;;  %478 = vperm.xlu1 %5339, %v472_v5   ;;  %v826_v19 = vld [vmem:[%s6903_s6 + $0x70] sm:$0xff]  ;;  %v825_v20 = vld [vmem:[%s6903_s6 + $0x68] sm:$0xff]  ;;  %v824_v21 = vld [vmem:[%s6903_s6 + $0x60] sm:$0xff]  ;;  %vm4491_vm15 = vcmask 720512   ;;  %s449_s24 = sand.u32 1, %s5400_s26   ;;  %s5422_s28 = smov [#allocation3]  }
  0x1d   : > { %5097 = vmatpush3.msk.msra.mxu0 %vm509_vm1, %v467_v6  ;;  %v823_v22 = vld [vmem:[%s6903_s6 + $0x58] sm:$0xff]  ;;  %v822_v23 = vld [vmem:[%s6903_s6 + $0x50] sm:$0xff]  ;;  %v821_v24 = vld [vmem:[%s6903_s6 + $0x48] sm:$0xff]  ;;  %vm4505_vm1 = vcmask 851712   ;;  %s450_s22 = scalar_lea.vmem [#allocation3], %s449_s24  ;;  %s4839_s21 = scalar_lea.sflag [#allocation4], %s449_s24 }
  0x1e   : > { %5099 = vmatmul.mubr.msk.f32.vlgmr.msra.gmra.mxu0 %vm496_vm0, %v469_v7  ;;  %v820_v25 = vld [vmem:[%s6903_s6 + $0x40] sm:$0xff]  ;;  %v819_v26 = vld [vmem:[%s6903_s6 + $0x38] sm:$0xff]  ;;  %v818_v27 = vld [vmem:[%s6903_s6 + $0x30] sm:$0xff]  ;;  %s4851_s23 = sshll.u32 %s450_s22, 4  ;;  %s5344_s14 = sshll.u32 %s5422_s28, 4  ;;  %s4852_s23 = int_to_ptr.vmem [resolvable:$true] %s4851_s23  ;;  %s5345_s14 = int_to_ptr.vmem [resolvable:$false] %s5344_s14 }
  0x1f   : > { %5101 = vmatprep.mubr.msk.f32.mxu0 %vm496_vm0, %v470_v10  ;;  %v817_v28 = vld [vmem:[%s6903_s6 + $0x28] sm:$0xff]  ;;  %v816_v29 = vld [vmem:[%s6903_s6 + $0x20] sm:$0xff]  ;;  %v815_v30 = vld [vmem:[%s6903_s6 + $0x18] sm:$0xff]  ;;  %s5340_s27 = scalar_lea.vmem %s4852_s23, 16  ;;  %s5346_s15 = scalar_lea.vmem %s5345_s14, 32 }
  0x20   : > { %655 = vperm.xlu0 %5338, %v617_v8   ;;  %650 = vperm.xlu1 %5339, %v616_v9   ;;  %v814_v31 = vld [vmem:[%s6903_s6 + $0x10] sm:$0xff]  ;;  %v813_v32 = vld [vmem:[%s6903_s6 + $0x8] sm:$0xff]  ;;  %v812_v33 = vld [vmem:[%s6903_s6] sm:$0xff]  ;;  %p5341_p12 = scmp.ne.s32.totalorder %s4852_s23, %s5340_s27  ;;  %p5347_p1 = scmp.lt.s32.totalorder %s4852_s23, %s5345_s14 }
  0x21   : > { %v1150_v34 = vld [vmem:[%s6905_s8] sm:$0xff]  ;;  %v1151_v35 = vld [vmem:[%s6905_s8 + $0x8] sm:$0xff]  ;;  %v1152_v38 = vld [vmem:[%s6905_s8 + $0x10] sm:$0xff]  ;;  %p5348_p2 = scmp.lt.s32.totalorder %s5346_s15, %s5340_s27 }
  0x22   : > { %5102 = vmatmul.mubr.msk.f32.gmra.mxu0 %vm496_vm0, %v471_v11  ;;  %v1166_v36 = vld [vmem:[%s6905_s8 + $0x80] sm:$0xff]  ;;  %v1167_v37 = vld [vmem:[%s6905_s8 + $0x88] sm:$0xff]  ;;  %v1168_v39 = vld [vmem:[%s6905_s8 + $0x90] sm:$0xff]  ;;  %vm4498_vm0 = vcmask 786112   ;;  %p5342_p13 = pnand %p5341_p12, %p5533_p4 }
  0x23   : > { %v1153_v40 = vld [vmem:[%s6905_s8 + $0x18] sm:$0xff]  ;;  %v1154_v42 = vld [vmem:[%s6905_s8 + $0x20] sm:$0xff]  ;;  %v1155_v44 = vld [vmem:[%s6905_s8 + $0x28] sm:$0xff]  ;;  %p5349_p3 = por %p5348_p2, %p5347_p1 }
  0x24   : > { %645 = vperm.xlu0 %5338, %v615_v12   ;;  %640 = vperm.xlu1 %5339, %v614_v13   ;;  %v1169_v41 = vld [vmem:[%s6905_s8 + $0x98] sm:$0xff]  ;;  %v1170_v43 = vld [vmem:[%s6905_s8 + $0xa0] sm:$0xff]  ;;  %v1171_v45 = vld [vmem:[%s6905_s8 + $0xa8] sm:$0xff]  ;;  %p5343_p0 = pneg %p5342_p13 }
  0x25   : > { %v1156_v46 = vld [vmem:[%s6905_s8 + $0x30] sm:$0xff]  ;;  %v1157_v48 = vld [vmem:[%s6905_s8 + $0x38] sm:$0xff]  ;;  %v1158_v50 = vld [vmem:[%s6905_s8 + $0x40] sm:$0xff] }
  0x26   : > { %v1172_v47 = vld [vmem:[%s6905_s8 + $0xb0] sm:$0xff]  ;;  %v1173_v49 = vld [vmem:[%s6905_s8 + $0xb8] sm:$0xff]  ;;  %v1174_v51 = vld [vmem:[%s6905_s8 + $0xc0] sm:$0xff]  ;;  %p5350_p5 = pnand %p5349_p3, %p5343_p0 }
  0x27   : > { %v602_v52 = vld [vmem:[%s6900_s3] sm:$0xff]  ;;  %v1159_v53 = vld [vmem:[%s6905_s8 + $0x48] sm:$0xff]  ;;  %v1160_v55 = vld [vmem:[%s6905_s8 + $0x50] sm:$0xff] }
  0x28   : > { %635 = vperm.xlu0 %5338, %v613_v14   ;;  %630 = vperm.xlu1 %5339, %v612_v15   ;;  %v1175_v54 = vld [vmem:[%s6905_s8 + $0xc8] sm:$0xff]  ;;  %v1176_v56 = vld [vmem:[%s6905_s8 + $0xd0] sm:$0xff]  ;;  %v1161_v57 = vld [vmem:[%s6905_s8 + $0x58] sm:$0xff] }
  0x29   : > { %5112 = vmatprep.mubr.msk.f32.mxu0 %vm658_vm2, %v602_v52  ;;  %v1177_v58 = vld [vmem:[%s6905_s8 + $0xd8] sm:$0xff]  ;;  %v1162_v59 = vld [vmem:[%s6905_s8 + $0x60] sm:$0xff]  ;;  %v1163_v61 = vld [vmem:[%s6905_s8 + $0x68] sm:$0xff] }
  0x2a   : > { %v1178_v60 = vld [vmem:[%s6905_s8 + $0xe0] sm:$0xff]  ;;  %v1179_v62 = vld [vmem:[%s6905_s8 + $0xe8] sm:$0xff]  ;;  %v1164_v63 = vld [vmem:[%s6905_s8 + $0x70] sm:$0xff] }
  0x2b   : > { %v1180_v0 = vld [vmem:[%s6905_s8 + $0xf0] sm:$0xff]  ;;  %v1165_v1 = vld [vmem:[%s6905_s8 + $0x78] sm:$0xff] }
  0x2c   : > { %625 = vperm.xlu0 %5338, %v611_v16   ;;  %620 = vperm.xlu1 %5339, %v610_v17   ;;  %v1181_v2 = vld [vmem:[%s6905_s8 + $0xf8] sm:$0xff] }
  0x30   : > { %905 = vperm.xlu0 %5338, %v827_v18   ;;  %900 = vperm.xlu1 %5339, %v826_v19   ;;  %v603_v19 = vld [vmem:[%s6900_s3 + $0x8] sm:$0xff] }
  0x34   : > { %895 = vperm.xlu0 %5338, %v825_v20   ;;  %890 = vperm.xlu1 %5339, %v824_v21   ;;  %v604_v20 = vld [vmem:[%s6900_s3 + $0x10] sm:$0xff]  ;;  %v605_v21 = vld [vmem:[%s6900_s3 + $0x18] sm:$0xff] }
  0x38   : > { %885 = vperm.xlu0 %5338, %v823_v22   ;;  %880 = vperm.xlu1 %5339, %v822_v23   ;;  %v606_v22 = vld [vmem:[%s6900_s3 + $0x20] sm:$0xff]  ;;  %v607_v23 = vld [vmem:[%s6900_s3 + $0x28] sm:$0xff] }
  0x3c   : > { %875 = vperm.xlu0 %5338, %v821_v24   ;;  %870 = vperm.xlu1 %5339, %v820_v25   ;;  %v608_v24 = vld [vmem:[%s6900_s3 + $0x30] sm:$0xff]  ;;  %v609_v25 = vld [vmem:[%s6900_s3 + $0x38] sm:$0xff] }
  0x40   : > { %865 = vperm.xlu0 %5338, %v819_v26   ;;  %860 = vperm.xlu1 %5339, %v818_v27   ;;  %v796_v26 = vld [vmem:[%s6902_s5] sm:$0xff] }
  0x44   : > { %855 = vperm.xlu0 %5338, %v817_v28   ;;  %850 = vperm.xlu1 %5339, %v816_v29  }
  0x48   : > { %845 = vperm.xlu0 %5338, %v815_v30   ;;  %840 = vperm.xlu1 %5339, %v814_v31  }
  0x4c   : > { %835 = vperm.xlu0 %5338, %v813_v32   ;;  %830 = vperm.xlu1 %5339, %v812_v33  }
  0x50   : > { %1184 = vperm.xlu0 %5338, %v1150_v34   ;;  %1189 = vperm.xlu1 %5339, %v1151_v35  }
  0x54   : > { %1264 = vperm.xlu0 %5338, %v1166_v36   ;;  %1269 = vperm.xlu1 %5339, %v1167_v37  }
  0x58   : > { %1194 = vperm.xlu0 %5338, %v1152_v38   ;;  %1274 = vperm.xlu1 %5339, %v1168_v39  }
  0x5c   : > { %1199 = vperm.xlu0 %5338, %v1153_v40   ;;  %1279 = vperm.xlu1 %5339, %v1169_v41  }
  0x60   : > { %1204 = vperm.xlu0 %5338, %v1154_v42   ;;  %1284 = vperm.xlu1 %5339, %v1170_v43  }
  0x64   : > { %1209 = vperm.xlu0 %5338, %v1155_v44   ;;  %1289 = vperm.xlu1 %5339, %v1171_v45  }
  0x68   : > { %1214 = vperm.xlu0 %5338, %v1156_v46   ;;  %1294 = vperm.xlu1 %5339, %v1172_v47  }
  0x6c   : > { %1219 = vperm.xlu0 %5338, %v1157_v48   ;;  %1299 = vperm.xlu1 %5339, %v1173_v49  }
  0x70   : > { %1224 = vperm.xlu0 %5338, %v1158_v50   ;;  %1304 = vperm.xlu1 %5339, %v1174_v51  }
  0x74   : > { %1229 = vperm.xlu0 %5338, %v1159_v53   ;;  %1309 = vperm.xlu1 %5339, %v1175_v54  }
  0x78   : > { %1234 = vperm.xlu0 %5338, %v1160_v55   ;;  %1314 = vperm.xlu1 %5339, %v1176_v56  }
  0x7c   : > { %1239 = vperm.xlu0 %5338, %v1161_v57   ;;  %1319 = vperm.xlu1 %5339, %v1177_v58  }
  0x80   : > { %1244 = vperm.xlu0 %5338, %v1162_v59   ;;  %1324 = vperm.xlu1 %5339, %v1178_v60   ;;  %v797_v59 = vld [vmem:[%s6902_s5 + $0x8] sm:$0xff]  ;;  %v798_v60 = vld [vmem:[%s6902_s5 + $0x10] sm:$0xff] }
  0x84   : > { %1249 = vperm.xlu0 %5338, %v1163_v61   ;;  %1329 = vperm.xlu1 %5339, %v1179_v62   ;;  %v799_v61 = vld [vmem:[%s6902_s5 + $0x18] sm:$0xff]  ;;  %v800_v62 = vld [vmem:[%s6902_s5 + $0x20] sm:$0xff] }
  0x88   : > { %1254 = vperm.xlu0 %5338, %v1164_v63   ;;  %1334 = vperm.xlu1 %5339, %v1180_v0   ;;  %v801_v63 = vld [vmem:[%s6902_s5 + $0x28] sm:$0xff]  ;;  %v802_v0 = vld [vmem:[%s6902_s5 + $0x30] sm:$0xff] }
  0x8c   : > { %1259 = vperm.xlu0 %5338, %v1165_v1   ;;  %1339 = vperm.xlu1 %5339, %v1181_v2   ;;  %v803_v1 = vld [vmem:[%s6902_s5 + $0x38] sm:$0xff]  ;;  %v804_v2 = vld [vmem:[%s6902_s5 + $0x40] sm:$0xff] }
  0x93   : > { %v494_v3 = vpop.permute.xlu0 %493  ;;  %v484_v5 = vpop.permute.xlu1 %483 }
  0x97   : > { %v489_v9 = vpop.permute.xlu0 %488  ;;  %v479_v14 = vpop.permute.xlu1 %478 }
  0x9b   : > { %v656_v29 = vpop.permute.xlu0 %655  ;;  %v651_v31 = vpop.permute.xlu1 %650 }
  0x9f   : > { %v646_v34 = vpop.permute.xlu0 %645  ;;  %v641_v36 = vpop.permute.xlu1 %640 }
  0xa3   : > { %v636_v43 = vpop.permute.xlu0 %635  ;;  %v631_v46 = vpop.permute.xlu1 %630 }
  0xa7   : > { %v626_v51 = vpop.permute.xlu0 %625  ;;  %v621_v54 = vpop.permute.xlu1 %620 }
  0xde   : > { %v5100_v4 = vpop.f32.mrf.mxu0 }
  0xdf   : > { %v585_v11 = vadd.f32 %v5100_v4, %v484_v5  ;;  %v806_v4 = vld [vmem:[%s6902_s5 + $0x50] sm:$0xff]  ;;  %v807_v5 = vld [vmem:[%s6902_s5 + $0x58] sm:$0xff] }
  0xe0   : > { %v579_v6 = vpop.f32.mrf.mxu0 }
  0xe1   : > { %v580_v15 = vadd.f32 %v579_v6, %v479_v14  ;;  %v599_v17 = vmax.f32 %v585_v11, 0.0  ;;  %v808_v6 = vld [vmem:[%s6902_s5 + $0x60] sm:$0xff] }
  0xe2   : > { %v5103_v7 = vpop.f32.mrf.mxu0 }
  0xe3   : > { %v595_v8 = vadd.f32 %v5103_v7, %v494_v3  ;;  %v598_v18 = vmax.f32 %v580_v15, 0.0  ;;  %v805_v3 = vld [vmem:[%s6902_s5 + $0x48] sm:$0xff] }
  0xe4   : > { %v589_v10 = vpop.f32.mrf.mxu0  ;;  %v809_v7 = vld [vmem:[%s6902_s5 + $0x68] sm:$0xff] }
  0xe5   : > { %v601_v12 = vmax.f32 %v595_v8, 0.0  ;;  %v590_v13 = vadd.f32 %v589_v10, %v489_v9  ;;  %v810_v8 = vld [vmem:[%s6902_s5 + $0x70] sm:$0xff]  ;;  %v811_v9 = vld [vmem:[%s6902_s5 + $0x78] sm:$0xff]  ;;  %v1118_v10 = vld [vmem:[%s6904_s7] sm:$0xff] }
  0xe6   : > { %5196 = vmatprep.mubr.f32.mxu1 %v1118_v10 }
  0xe7   : > { %v600_v16 = vmax.f32 %v590_v13, 0.0  ;;  %5104 = vmatprep.subr.mxu0 %v601_v12 }
  0xe8   : > { %5105 = vmatpush3.msra.mxu0 %v601_v12 }
  0xe9   : > { %5106 = vmatprep.subr.mxu0 %v600_v16 }
  0xea   : > { %5107 = vmatpush3.msra.mxu0 %v600_v16 }
  0xeb   : > { %5108 = vmatprep.subr.mxu0 %v599_v17 }
  0xec   : > { %5109 = vmatpush3.msra.mxu0 %v599_v17  ;;  %v906_v17 = vpop.permute.xlu0 %905 }
  0xed   : > { %5110 = vmatprep.subr.mxu0 %v598_v18 }
  0xee   : > { %5111 = vmatpush3.msra.mxu0 %v598_v18 }
  0xef   : > { %5113 = vmatmul.mubr.msk.f32.vlgmr.msra.gmra.mxu0 %vm658_vm2, %v603_v19  ;;  %v901_v19 = vpop.permute.xlu1 %900 }
  0xf0   : > { %5115 = vmatprep.mubr.msk.f32.mxu0 %vm658_vm2, %v604_v20 }
  0xf3   : > { %5116 = vmatmul.mubr.msk.f32.gmra.mxu0 %vm658_vm2, %v605_v21 }
  0xf4   : > { %5118 = vmatprep.mubr.msk.f32.mxu0 %vm658_vm2, %v606_v22  ;;  %v896_v22 = vpop.permute.xlu0 %895 }
  0xf7   : > { %5119 = vmatmul.mubr.msk.f32.gmra.mxu0 %vm658_vm2, %v607_v23 }
  0xf8   : > { %5121 = vmatprep.mubr.msk.f32.mxu0 %vm658_vm2, %v608_v24  ;;  %v891_v24 = vpop.permute.xlu1 %890 }
  0xfb   : > { %5122 = vmatmul.mubr.msk.f32.gmra.mxu0 %vm658_vm2, %v609_v25  ;;  %vm4512_vm2 = vcmask 917312  }
  0xfc   : > { %5140 = vmatprep.mubr.msk.f32.mxu0 %vm908_vm3, %v796_v26 }
 0x1af   : > { %v5114_v27 = vpop.f32.mrf.mxu0 }
 0x1b0   : > { %v755_v52 = vadd.f32 %v5114_v27, %v626_v51  ;;  %v886_v27 = vpop.permute.xlu0 %885 }
 0x1b1   : > { %v749_v28 = vpop.f32.mrf.mxu0 }
 0x1b2   : > { %v750_v55 = vadd.f32 %v749_v28, %v621_v54  ;;  %v789_v57 = vmax.f32 %v755_v52, 0.0 }
 0x1b3   : > { %v5117_v30 = vpop.f32.mrf.mxu0 }
 0x1b4   : > { %v765_v47 = vadd.f32 %v5117_v30, %v636_v43  ;;  %v788_v58 = vmax.f32 %v750_v55, 0.0 }
 0x1b5   : > { %v759_v32 = vpop.f32.mrf.mxu0 }
 0x1b6   : > { %v760_v49 = vadd.f32 %v759_v32, %v631_v46  ;;  %v791_v53 = vmax.f32 %v765_v47, 0.0 }
 0x1b7   : > { %v5120_v33 = vpop.f32.mrf.mxu0 }
 0x1b8   : > { %v775_v40 = vadd.f32 %v5120_v33, %v646_v34  ;;  %v790_v56 = vmax.f32 %v760_v49, 0.0  ;;  %v876_v33 = vpop.permute.xlu0 %875 }
 0x1b9   : > { %v769_v35 = vpop.f32.mrf.mxu0 }
 0x1ba   : > { %v770_v44 = vadd.f32 %v769_v35, %v641_v36  ;;  %v793_v48 = vmax.f32 %v775_v40, 0.0 }
 0x1bb   : > { %v5123_v37 = vpop.f32.mrf.mxu0 }
 0x1bc   : > { %v785_v38 = vadd.f32 %v5123_v37, %v656_v29  ;;  %v792_v50 = vmax.f32 %v770_v44, 0.0  ;;  %v881_v29 = vpop.permute.xlu1 %880  ;;  %v866_v43 = vpop.permute.xlu0 %865 }
 0x1bd   : > { %v779_v39 = vpop.f32.mrf.mxu0 }
 0x1be   : > { %v795_v41 = vmax.f32 %v785_v38, 0.0  ;;  %v780_v42 = vadd.f32 %v779_v39, %v651_v31 }
 0x1c0   : > { %v794_v45 = vmax.f32 %v780_v42, 0.0  ;;  %5124 = vmatprep.subr.mxu0 %v795_v41  ;;  %v871_v38 = vpop.permute.xlu1 %870  ;;  %v856_v51 = vpop.permute.xlu0 %855 }
 0x1c1   : > { %5125 = vmatpush3.msra.mxu0 %v795_v41 }
 0x1c2   : > { %5126 = vmatprep.subr.mxu0 %v794_v45 }
 0x1c3   : > { %5127 = vmatpush3.msra.mxu0 %v794_v45 }
 0x1c4   : > { %5128 = vmatprep.subr.mxu0 %v793_v48  ;;  %v861_v46 = vpop.permute.xlu1 %860 }
 0x1c5   : > { %5129 = vmatpush3.msra.mxu0 %v793_v48 }
 0x1c6   : > { %5130 = vmatprep.subr.mxu0 %v792_v50 }
 0x1c7   : > { %5131 = vmatpush3.msra.mxu0 %v792_v50 }
 0x1c8   : > { %5132 = vmatprep.subr.mxu0 %v791_v53  ;;  %v851_v54 = vpop.permute.xlu1 %850 }
 0x1c9   : > { %5133 = vmatpush3.msra.mxu0 %v791_v53 }
 0x1ca   : > { %5134 = vmatprep.subr.mxu0 %v790_v56 }
 0x1cb   : > { %5135 = vmatpush3.msra.mxu0 %v790_v56 }
 0x1cc   : > { %5136 = vmatprep.subr.mxu0 %v789_v57 }
 0x1cd   : > { %5137 = vmatpush3.msra.mxu0 %v789_v57 }
 0x1ce   : > { %5138 = vmatprep.subr.mxu0 %v788_v58 }
 0x1cf   : > { %5139 = vmatpush3.msra.mxu0 %v788_v58 }
 0x1d0   : > { %5141 = vmatmul.mubr.msk.f32.vlgmr.msra.gmra.mxu0 %vm908_vm3, %v797_v59  ;;  %v846_v59 = vpop.permute.xlu0 %845 }
 0x1d1   : > { %5143 = vmatprep.mubr.msk.f32.mxu0 %vm908_vm3, %v798_v60 }
 0x1d4   : > { %5144 = vmatmul.mubr.msk.f32.gmra.mxu0 %vm908_vm3, %v799_v61 }
 0x1d5   : > { %5146 = vmatprep.mubr.msk.f32.mxu0 %vm908_vm3, %v800_v62  ;;  %v841_v62 = vpop.permute.xlu1 %840 }
 0x1d8   : > { %5147 = vmatmul.mubr.msk.f32.gmra.mxu0 %vm908_vm3, %v801_v63 }
 0x1d9   : > { %5149 = vmatprep.mubr.msk.f32.mxu0 %vm908_vm3, %v802_v0 }
 0x1dc   : > { %5150 = vmatmul.mubr.msk.f32.gmra.mxu0 %vm908_vm3, %v803_v1 }
 0x1dd   : > { %5152 = vmatprep.mubr.msk.f32.mxu0 %vm908_vm3, %v804_v2 }
 0x1e0   : > { %5153 = vmatmul.mubr.msk.f32.gmra.mxu0 %vm908_vm3, %v805_v3  ;;  %v836_v3 = vpop.permute.xlu0 %835 }
 0x1e1   : > { %5155 = vmatprep.mubr.msk.f32.mxu0 %vm908_vm3, %v806_v4 }
 0x1e4   : > { %5156 = vmatmul.mubr.msk.f32.gmra.mxu0 %vm908_vm3, %v807_v5 }
 0x1e5   : > { %5158 = vmatprep.mubr.msk.f32.mxu0 %vm908_vm3, %v808_v6  ;;  %v831_v6 = vpop.permute.xlu1 %830 }
 0x1e8   : > { %5159 = vmatmul.mubr.msk.f32.gmra.mxu0 %vm908_vm3, %v809_v7 }
 0x1e9   : > { %5161 = vmatprep.mubr.msk.f32.mxu0 %vm908_vm3, %v810_v8 }
 0x1ec   : > { %5162 = vmatmul.mubr.msk.f32.gmra.mxu0 %vm908_vm3, %v811_v9  ;;  %vm4519_vm3 = vcmask 982912  }
 0x290   : > { %v5848_v11 = vpop.f32.mrf.mxu0 }
 0x291   : > { %v1029_v4 = vadd.f32 %v5848_v11, %v836_v3  ;;  %v1120_v11 = vld [vmem:[%s6904_s7 + $0x10] sm:$0xff] }
 0x292   : > { %v5850_v12 = vpop.f32.mrf.mxu0 }
 0x293   : > { %v1024_v7 = vadd.f32 %v5850_v12, %v831_v6  ;;  %v1103_v9 = vmax.f32 %v1029_v4, 0.0  ;;  %v1121_v12 = vld [vmem:[%s6904_s7 + $0x18] sm:$0xff] }
 0x294   : > { %v5852_v13 = vpop.f32.mrf.mxu0 }
 0x295   : > { %v1039_v63 = vadd.f32 %v5852_v13, %v846_v59  ;;  %v1102_v10 = vmax.f32 %v1024_v7, 0.0  ;;  %v1119_v13 = vld [vmem:[%s6904_s7 + $0x8] sm:$0xff] }
 0x296   : > { %v5854_v14 = vpop.f32.mrf.mxu0 }
 0x297   : > { %v1034_v1 = vadd.f32 %v5854_v14, %v841_v62  ;;  %v1105_v5 = vmax.f32 %v1039_v63, 0.0  ;;  %v1122_v14 = vld [vmem:[%s6904_s7 + $0x20] sm:$0xff] }
 0x298   : > { %v5148_v15 = vpop.f32.mrf.mxu0 }
 0x299   : > { %v1049_v57 = vadd.f32 %v5148_v15, %v856_v51  ;;  %v1104_v8 = vmax.f32 %v1034_v1, 0.0  ;;  %v1123_v15 = vld [vmem:[%s6904_s7 + $0x28] sm:$0xff] }
 0x29a   : > { %v1043_v16 = vpop.f32.mrf.mxu0 }
 0x29b   : > { %v1044_v60 = vadd.f32 %v1043_v16, %v851_v54  ;;  %v1107_v0 = vmax.f32 %v1049_v57, 0.0  ;;  %v1124_v16 = vld [vmem:[%s6904_s7 + $0x30] sm:$0xff] }
 0x29c   : > { %v5151_v18 = vpop.f32.mrf.mxu0 }
 0x29d   : > { %v1059_v52 = vadd.f32 %v5151_v18, %v866_v43  ;;  %v1106_v2 = vmax.f32 %v1044_v60, 0.0  ;;  %v1126_v18 = vld [vmem:[%s6904_s7 + $0x40] sm:$0xff] }
 0x29e   : > { %v1053_v20 = vpop.f32.mrf.mxu0 }
 0x29f   : > { %v1054_v55 = vadd.f32 %v1053_v20, %v861_v46  ;;  %v1109_v58 = vmax.f32 %v1059_v52, 0.0  ;;  %v1128_v20 = vld [vmem:[%s6904_s7 + $0x50] sm:$0xff] }
 0x2a0   : > { %v5154_v21 = vpop.f32.mrf.mxu0 }
 0x2a1   : > { %v1069_v47 = vadd.f32 %v5154_v21, %v876_v33  ;;  %v1108_v61 = vmax.f32 %v1054_v55, 0.0  ;;  %v1129_v21 = vld [vmem:[%s6904_s7 + $0x58] sm:$0xff] }
 0x2a2   : > { %v1063_v23 = vpop.f32.mrf.mxu0  ;;  %v1141_v33 = vld [vmem:[%s6904_s7 + $0xb8] sm:$0xff] }
 0x2a3   : > { %v1064_v49 = vadd.f32 %v1063_v23, %v871_v38  ;;  %v1111_v53 = vmax.f32 %v1069_v47, 0.0  ;;  %v1131_v23 = vld [vmem:[%s6904_s7 + $0x68] sm:$0xff]  ;;  %v1146_v38 = vld [vmem:[%s6904_s7 + $0xe0] sm:$0xff] }
 0x2a4   : > { %v5157_v25 = vpop.f32.mrf.mxu0 }
 0x2a5   : > { %v1079_v41 = vadd.f32 %v5157_v25, %v886_v27  ;;  %v1110_v56 = vmax.f32 %v1064_v49, 0.0  ;;  %v1133_v25 = vld [vmem:[%s6904_s7 + $0x78] sm:$0xff]  ;;  %v1135_v27 = vld [vmem:[%s6904_s7 + $0x88] sm:$0xff]  ;;  %v1190_v49 = vpop.permute.xlu1 %1189 }
 0x2a6   : > { %v1073_v26 = vpop.f32.mrf.mxu0 }
 0x2a7   : > { %v1074_v44 = vadd.f32 %v1073_v26, %v881_v29  ;;  %v1113_v48 = vmax.f32 %v1079_v41, 0.0  ;;  %v1134_v26 = vld [vmem:[%s6904_s7 + $0x80] sm:$0xff]  ;;  %v1137_v29 = vld [vmem:[%s6904_s7 + $0x98] sm:$0xff] }
 0x2a8   : > { %v5160_v28 = vpop.f32.mrf.mxu0  ;;  %v1149_v41 = vld [vmem:[%s6904_s7 + $0xf8] sm:$0xff] }
 0x2a9   : > { %v1089_v35 = vadd.f32 %v5160_v28, %v896_v22  ;;  %v1112_v50 = vmax.f32 %v1074_v44, 0.0  ;;  %v1130_v22 = vld [vmem:[%s6904_s7 + $0x60] sm:$0xff]  ;;  %v1136_v28 = vld [vmem:[%s6904_s7 + $0x90] sm:$0xff]  ;;  %v5955_v51 = vpop.permute.xlu1 %1269 }
 0x2aa   : > { %v1083_v30 = vpop.f32.mrf.mxu0 }
 0x2ab   : > { %v1084_v39 = vadd.f32 %v1083_v30, %v891_v24  ;;  %v1115_v42 = vmax.f32 %v1089_v35, 0.0  ;;  %v1132_v24 = vld [vmem:[%s6904_s7 + $0x70] sm:$0xff]  ;;  %v1138_v30 = vld [vmem:[%s6904_s7 + $0xa0] sm:$0xff]  ;;  %v1143_v35 = vld [vmem:[%s6904_s7 + $0xc8] sm:$0xff] }
 0x2ac   : > { %v5163_v31 = vpop.f32.mrf.mxu0 }
 0x2ad   : > { %v1099_v32 = vadd.f32 %v5163_v31, %v906_v17  ;;  %v1114_v45 = vmax.f32 %v1084_v39, 0.0  ;;  %v1125_v17 = vld [vmem:[%s6904_s7 + $0x38] sm:$0xff]  ;;  %v1139_v31 = vld [vmem:[%s6904_s7 + $0xa8] sm:$0xff]  ;;  %v5958_v62 = vpop.permute.xlu1 %1274 }
 0x2ae   : > { %v1093_v34 = vpop.f32.mrf.mxu0  ;;  %v1147_v39 = vld [vmem:[%s6904_s7 + $0xe8] sm:$0xff] }
 0x2af   : > { %v1117_v36 = vmax.f32 %v1099_v32, 0.0  ;;  %v1094_v37 = vadd.f32 %v1093_v34, %v901_v19  ;;  %v1127_v19 = vld [vmem:[%s6904_s7 + $0x48] sm:$0xff]  ;;  %v1140_v32 = vld [vmem:[%s6904_s7 + $0xb0] sm:$0xff]  ;;  %v1142_v34 = vld [vmem:[%s6904_s7 + $0xc0] sm:$0xff] }
 0x2b1   : > { %v1116_v40 = vmax.f32 %v1094_v37, 0.0  ;;  %5164 = vmatprep.subr.mxu1 %v1117_v36  ;;  %v1145_v37 = vld [vmem:[%s6904_s7 + $0xd8] sm:$0xff] }
 0x2b2   : > { %5165 = vmatpush3.msra.mxu1 %v1117_v36  ;;  %v1144_v36 = vld [vmem:[%s6904_s7 + $0xd0] sm:$0xff] }
 0x2b3   : > { %5166 = vmatprep.subr.mxu1 %v1116_v40 }
 0x2b4   : > { %5167 = vmatpush3.msra.mxu1 %v1116_v40  ;;  %v1148_v40 = vld [vmem:[%s6904_s7 + $0xf0] sm:$0xff] }
 0x2b5   : > { %5168 = vmatprep.subr.mxu1 %v1115_v42 }
 0x2b6   : > { %5169 = vmatpush3.msra.mxu1 %v1115_v42  ;;  %v1185_v42 = vpop.permute.xlu0 %1184 }
 0x2b7   : > { %5170 = vmatprep.subr.mxu1 %v1114_v45 }
 0x2b8   : > { %5171 = vmatpush3.msra.mxu1 %v1114_v45 }
 0x2b9   : > { %5172 = vmatprep.subr.mxu1 %v1113_v48 }
 0x2ba   : > { %5173 = vmatpush3.msra.mxu1 %v1113_v48  ;;  %v5953_v43 = vpop.permute.xlu0 %1264 }
 0x2bb   : > { %5174 = vmatprep.subr.mxu1 %v1112_v50 }
 0x2bc   : > { %5175 = vmatpush3.msra.mxu1 %v1112_v50 }
 0x2bd   : > { %5176 = vmatprep.subr.mxu1 %v1111_v53 }
 0x2be   : > { %5177 = vmatpush3.msra.mxu1 %v1111_v53  ;;  %v1195_v44 = vpop.permute.xlu0 %1194 }
 0x2bf   : > { %5178 = vmatprep.subr.mxu1 %v1110_v56 }
 0x2c0   : > { %5179 = vmatpush3.msra.mxu1 %v1110_v56 }
 0x2c1   : > { %5180 = vmatprep.subr.mxu1 %v1109_v58 }
 0x2c2   : > { %5181 = vmatpush3.msra.mxu1 %v1109_v58  ;;  %v1200_v45 = vpop.permute.xlu0 %1199 }
 0x2c3   : > { %5182 = vmatprep.subr.mxu1 %v1108_v61 }
 0x2c4   : > { %5183 = vmatpush3.msra.mxu1 %v1108_v61 }
 0x2c5   : > { %5184 = vmatprep.subr.mxu1 %v1107_v0 }
 0x2c6   : > { %5185 = vmatpush3.msra.mxu1 %v1107_v0  ;;  %v1205_v46 = vpop.permute.xlu0 %1204 }
 0x2c7   : > { %5186 = vmatprep.subr.mxu1 %v1106_v2 }
 0x2c8   : > { %5187 = vmatpush3.msra.mxu1 %v1106_v2 }
 0x2c9   : > { %5188 = vmatprep.subr.mxu1 %v1105_v5 }
 0x2ca   : > { %5189 = vmatpush3.msra.mxu1 %v1105_v5  ;;  %v1210_v47 = vpop.permute.xlu0 %1209 }
 0x2cb   : > { %5190 = vmatprep.subr.mxu1 %v1104_v8 }
 0x2cc   : > { %5191 = vmatpush3.msra.mxu1 %v1104_v8 }
 0x2cd   : > { %5192 = vmatprep.subr.mxu1 %v1103_v9 }
 0x2ce   : > { %5193 = vmatpush3.msra.mxu1 %v1103_v9  ;;  %v1215_v48 = vpop.permute.xlu0 %1214  ;;  %v1280_v9 = vpop.permute.xlu1 %1279 }
 0x2cf   : > { %5194 = vmatprep.subr.mxu1 %v1102_v10 }
 0x2d0   : > { %5195 = vmatpush3.msra.mxu1 %v1102_v10 }
 0x2d1   : > { %5197 = vmatmul.mubr.f32.vlgmr.msra.gmra.mxu1 %v1119_v13 }
 0x2d2   : > { %5199 = vmatprep.mubr.f32.mxu1 %v1120_v11  ;;  %v1220_v50 = vpop.permute.xlu0 %1219 }
 0x2d5   : > { %5200 = vmatmul.mubr.f32.gmra.mxu1 %v1121_v12 }
 0x2d6   : > { %5202 = vmatprep.mubr.f32.mxu1 %v1122_v14  ;;  %v1225_v58 = vpop.permute.xlu0 %1224 }
 0x2d9   : > { %5203 = vmatmul.mubr.f32.gmra.mxu1 %v1123_v15 }
 0x2da   : > { %5205 = vmatprep.mubr.f32.mxu1 %v1124_v16  ;;  %v1230_v8 = vpop.permute.xlu0 %1229 }
 0x2dd   : > { %5206 = vmatmul.mubr.f32.gmra.mxu1 %v1125_v17 }
 0x2de   : > { %5208 = vmatprep.mubr.f32.mxu1 %v1126_v18  ;;  %v1235_v16 = vpop.permute.xlu0 %1234 }
 0x2e1   : > { %5209 = vmatmul.mubr.f32.gmra.mxu1 %v1127_v19 }
 0x2e2   : > { %5211 = vmatprep.mubr.f32.mxu1 %v1128_v20  ;;  %v5964_v20 = vpop.permute.xlu1 %1284 }
 0x2e5   : > { %5212 = vmatmul.mubr.f32.gmra.mxu1 %v1129_v21 }
 0x2e6   : > { %5214 = vmatprep.mubr.f32.mxu1 %v1130_v22 }
 0x2e9   : > { %5215 = vmatmul.mubr.f32.gmra.mxu1 %v1131_v23 }
 0x2ea   : > { %5217 = vmatprep.mubr.f32.mxu1 %v1132_v24 }
 0x2ed   : > { %5218 = vmatmul.mubr.f32.gmra.mxu1 %v1133_v25 }
 0x2ee   : > { %5220 = vmatprep.mubr.f32.mxu1 %v1134_v26 }
 0x2f1   : > { %5221 = vmatmul.mubr.f32.gmra.mxu1 %v1135_v27  ;;  %v1240_v27 = vpop.permute.xlu0 %1239 }
 0x2f2   : > { %5223 = vmatprep.mubr.f32.mxu1 %v1136_v28  ;;  %v1290_v28 = vpop.permute.xlu1 %1289 }
 0x2f5   : > { %5224 = vmatmul.mubr.f32.gmra.mxu1 %v1137_v29 }
 0x2f6   : > { %5226 = vmatprep.mubr.f32.mxu1 %v1138_v30 }
 0x2f9   : > { %5227 = vmatmul.mubr.f32.gmra.mxu1 %v1139_v31 }
 0x2fa   : > { %5229 = vmatprep.mubr.f32.mxu1 %v1140_v32 }
 0x2fd   : > { %5230 = vmatmul.mubr.f32.gmra.mxu1 %v1141_v33 }
 0x2fe   : > { %5232 = vmatprep.mubr.f32.mxu1 %v1142_v34 }
 0x301   : > { %5233 = vmatmul.mubr.f32.gmra.mxu1 %v1143_v35  ;;  %v1245_v35 = vpop.permute.xlu0 %1244 }
 0x302   : > { %5235 = vmatprep.mubr.f32.mxu1 %v1144_v36 }
 0x305   : > { %5236 = vmatmul.mubr.f32.gmra.mxu1 %v1145_v37 }
 0x306   : > { %5238 = vmatprep.mubr.f32.mxu1 %v1146_v38 }
 0x309   : > { %5239 = vmatmul.mubr.f32.gmra.mxu1 %v1147_v39  ;;  %v5969_v39 = vpop.permute.xlu1 %1294 }
 0x30a   : > { %5241 = vmatprep.mubr.f32.mxu1 %v1148_v40 }
 0x30d   : > { %5242 = vmatmul.mubr.f32.gmra.mxu1 %v1149_v41 }
 0x391   : > { %v5198_v52 = vpop.f32.mrf.mxu1 }
 0x392   : > { %v1414_v53 = vadd.f32 %v5198_v52, %v1190_v49  ;;  %v1300_v52 = vpop.permute.xlu1 %1299 }
 0x393   : > { %v1408_v54 = vpop.f32.mrf.mxu1 }
 0x394   : > { %v1568_v55 = vmax.f32 %v1414_v53, 0.0  ;;  %v1409_v56 = vadd.f32 %v1408_v54, %v1185_v42 }
 0x395   : > { %v5201_v57 = vpop.f32.mrf.mxu1 }
 0x396   : > { %v1567_v59 = vmax.f32 %v1409_v56, 0.0  ;;  %v1424_v60 = vadd.f32 %v5201_v57, %v1200_v45  ;;  %v1604_v61 = vsel %vm1600_vm4, %v1568_v55, 0.0 }
 0x397   : > { %1605 = vadd.xlane.f32.xlu1 %v1604_v61  ;;  %v1418_v63 = vpop.f32.mrf.mxu1 }
 0x398   : > { %v1570_v0 = vmax.f32 %v1424_v60, 0.0  ;;  %v1419_v1 = vadd.f32 %v1418_v63, %v1195_v44  ;;  %v1601_v2 = vsel %vm1600_vm4, %v1567_v59, 0.0 }
 0x399   : > { %v5204_v3 = vpop.f32.mrf.mxu1  ;;  %1602 = vadd.xlane.f32.xlu0 %v1601_v2 }
 0x39a   : > { %v1569_v4 = vmax.f32 %v1419_v1, 0.0  ;;  %v1434_v5 = vadd.f32 %v5204_v3, %v1210_v47  ;;  %v1610_v6 = vsel %vm1600_vm4, %v1570_v0, 0.0  ;;  %v1305_v3 = vpop.permute.xlu1 %1304 }
 0x39b   : > { %1611 = vadd.xlane.f32.xlu1 %v1610_v6  ;;  %v1428_v7 = vpop.f32.mrf.mxu1 }
 0x39c   : > { %v1572_v13 = vmax.f32 %v1434_v5, 0.0  ;;  %v1429_v11 = vadd.f32 %v1428_v7, %v1205_v46  ;;  %v1607_v12 = vsel %vm1600_vm4, %v1569_v4, 0.0 }
 0x39d   : > { %v5207_v10 = vpop.f32.mrf.mxu1 }
 0x39e   : > { %v1571_v17 = vmax.f32 %v1429_v11, 0.0  ;;  %v1444_v18 = vadd.f32 %v5207_v10, %v1220_v50  ;;  %v1616_v19 = vsel %vm1600_vm4, %v1572_v13, 0.0  ;;  %v1310_v11 = vpop.permute.xlu1 %1309 }
 0x39f   : > { %v1438_v14 = vpop.f32.mrf.mxu1  ;;  %1608 = vadd.xlane.f32.xlu1 %v1607_v12 }
 0x3a0   : > { %v1574_v23 = vmax.f32 %v1444_v18, 0.0  ;;  %v1439_v24 = vadd.f32 %v1438_v14, %v1215_v48  ;;  %v1613_v25 = vsel %vm1600_vm4, %v1571_v17, 0.0  ;;  %v1250_v48 = vpop.permute.xlu0 %1249 }
 0x3a1   : > { %v5210_v15 = vpop.f32.mrf.mxu1 }
 0x3a2   : > { %v1573_v30 = vmax.f32 %v1439_v24, 0.0  ;;  %v1454_v31 = vadd.f32 %v5210_v15, %v1230_v8  ;;  %v1622_v32 = vsel %vm1600_vm4, %v1574_v23, 0.0 }
 0x3a3   : > { %v1448_v21 = vpop.f32.mrf.mxu1  ;;  %1617 = vadd.xlane.f32.xlu1 %v1616_v19 }
 0x3a4   : > { %v1576_v36 = vmax.f32 %v1454_v31, 0.0  ;;  %v1449_v37 = vadd.f32 %v1448_v21, %v1225_v58  ;;  %v1619_v38 = vsel %vm1600_vm4, %v1573_v30, 0.0  ;;  %v1255_v63 = vpop.permute.xlu0 %1254 }
 0x3a5   : > { %v5213_v22 = vpop.f32.mrf.mxu1 }
 0x3a6   : > { %v1464_v41 = vadd.f32 %v5213_v22, %v1240_v27  ;;  %v1575_v44 = vmax.f32 %v1449_v37, 0.0  ;;  %v1628_v46 = vsel %vm1600_vm4, %v1576_v36, 0.0  ;;  %v1315_v27 = vpop.permute.xlu1 %1314 }
 0x3a7   : > { %v1458_v26 = vpop.f32.mrf.mxu1  ;;  %1614 = vadd.xlane.f32.xlu1 %v1613_v25 }
 0x3a8   : > { %v1578_v53 = vmax.f32 %v1464_v41, 0.0  ;;  %v1459_v54 = vadd.f32 %v1458_v26, %v1235_v16  ;;  %v1625_v58 = vsel %vm1600_vm4, %v1575_v44, 0.0 }
 0x3a9   : > { %v5216_v29 = vpop.f32.mrf.mxu1 }
 0x3aa   : > { %v1474_v61 = vadd.f32 %v5216_v29, %v1250_v48 }
 0x3ab   : > { %v1468_v33 = vpop.f32.mrf.mxu1  ;;  %1623 = vadd.xlane.f32.xlu1 %v1622_v32 }
 0x3ac   : > { %v1580_v5 = vmax.f32 %v1474_v61, 0.0  ;;  %v1469_v6 = vadd.f32 %v1468_v33, %v1245_v35 }
 0x3ad   : > { %v5219_v34 = vpop.f32.mrf.mxu1 }
 0x3ae   : > { %v1579_v12 = vmax.f32 %v1469_v6, 0.0  ;;  %v1640_v17 = vsel %vm1600_vm4, %v1580_v5, 0.0 }
 0x3af   : > { %v1478_v40 = vpop.f32.mrf.mxu1  ;;  %1620 = vadd.xlane.f32.xlu1 %v1619_v38 }
 0x3b0   : > { %v1479_v22 = vadd.f32 %v1478_v40, %v1255_v63  ;;  %v1637_v25 = vsel %vm1600_vm4, %v1579_v12, 0.0 }
 0x3b1   : > { %v5222_v42 = vpop.f32.mrf.mxu1 }
 0x3b2   : > { %v1494_v45 = vadd.f32 %v5222_v42, %v5955_v51  ;;  %v1577_v51 = vmax.f32 %v1459_v54, 0.0 }
 0x3b3   : > { %v1488_v47 = vpop.f32.mrf.mxu1  ;;  %1629 = vadd.xlane.f32.xlu1 %v1628_v46 }
 0x3b4   : > { %v1584_v49 = vmax.f32 %v1494_v45, 0.0  ;;  %v1489_v50 = vadd.f32 %v1488_v47, %v5953_v43  ;;  %v1634_v43 = vsel %vm1600_vm4, %v1578_v53, 0.0 }
 0x3b5   : > { %v5225_v55 = vpop.f32.mrf.mxu1 }
 0x3b6   : > { %v1583_v56 = vmax.f32 %v1489_v50, 0.0  ;;  %v1504_v57 = vadd.f32 %v5225_v55, %v1280_v9  ;;  %v1652_v59 = vsel %vm1600_vm4, %v1584_v49, 0.0  ;;  %v1631_v9 = vsel %vm1600_vm4, %v1577_v51, 0.0 }
 0x3b7   : > { %v1498_v60 = vpop.f32.mrf.mxu1  ;;  %1626 = vadd.xlane.f32.xlu1 %v1625_v58  ;;  %1653 = vadd.xlane.f32.xlu0 %v1652_v59 }
 0x3b8   : > { %v1586_v0 = vmax.f32 %v1504_v57, 0.0  ;;  %v1499_v1 = vadd.f32 %v1498_v60, %v5958_v62  ;;  %v1649_v2 = vsel %vm1600_vm4, %v1583_v56, 0.0  ;;  %v1260_v62 = vpop.permute.xlu0 %1259 }
 0x3b9   : > { %v5228_v4 = vpop.f32.mrf.mxu1  ;;  %v1484_v14 = vadd.f32 %v5219_v34, %v1260_v62  ;;  %v1320_v34 = vpop.permute.xlu1 %1319  ;;  %v5419_v62 = vmov 1966171168  }
 0x3ba   : > { %v1585_v7 = vmax.f32 %v1499_v1, 0.0  ;;  %v1514_v8 = vadd.f32 %v5228_v4, %v1290_v28  ;;  %v1658_v10 = vsel %vm1600_vm4, %v1586_v0, 0.0 }
 0x3bb   : > { %1635 = vadd.xlane.f32.xlu1 %v1634_v43  ;;  %1650 = vadd.xlane.f32.xlu0 %v1649_v2  ;;  %v1508_v13 = vpop.f32.mrf.mxu1  ;;  %v1582_v21 = vmax.f32 %v1484_v14, 0.0 }
 0x3bc   : > { %v1588_v15 = vmax.f32 %v1514_v8, 0.0  ;;  %v1509_v16 = vadd.f32 %v1508_v13, %v5964_v20  ;;  %v1655_v18 = vsel %vm1600_vm4, %v1585_v7, 0.0  ;;  %v1581_v20 = vmax.f32 %v1479_v22, 0.0 }
 0x3bd   : > { %v5231_v19 = vpop.f32.mrf.mxu1  ;;  %v1646_v31 = vsel %vm1600_vm4, %v1582_v21, 0.0  ;;  %v1325_v44 = vpop.permute.xlu1 %1324  ;;  %v462_v13 = vlaneseq }
 0x3be   : > { %v1587_v23 = vmax.f32 %v1509_v16, 0.0  ;;  %v1524_v24 = vadd.f32 %v5231_v19, %v1300_v52  ;;  %v1664_v26 = vsel %vm1600_vm4, %v1588_v15, 0.0  ;;  %v1643_v37 = vsel %vm1600_vm4, %v1581_v20, 0.0 }
 0x3bf   : > { %1632 = vadd.xlane.f32.xlu1 %v1631_v9  ;;  %1659 = vadd.xlane.f32.xlu0 %v1658_v10  ;;  %v1518_v28 = vpop.f32.mrf.mxu1  ;;  %v6001_v12 = vshrl.u32 %v462_v13, 7  ;;  %vm6624_vm5 = vcmp.lt.s32.totalorder %v462_v13, 256 }
 0x3c0   : > { %v1590_v29 = vmax.f32 %v1524_v24, 0.0  ;;  %v1519_v30 = vadd.f32 %v1518_v28, %v5969_v39  ;;  %v1661_v32 = vsel %vm1600_vm4, %v1587_v23, 0.0 }
 0x3c1   : > { %v5234_v33 = vpop.f32.mrf.mxu1  ;;  %v1330_v50 = vpop.permute.xlu1 %1329  ;;  %v6004_v15 = vsub.s32 0, %v6001_v12  ;;  %v6007_v16 = vsub.s32 1, %v6001_v12  ;;  %v6016_v19 = vsub.s32 4, %v6001_v12  ;;  %v6019_v21 = vsub.s32 5, %v6001_v12 }
 0x3c2   : > { %v1589_v35 = vmax.f32 %v1519_v30, 0.0  ;;  %v1534_v36 = vadd.f32 %v5234_v33, %v1310_v11  ;;  %v1670_v38 = vsel %vm1600_vm4, %v1590_v29, 0.0  ;;  %v2758_v11 = vunpack.c.l.s4 %v5419_v62 }
 0x3c3   : > { %1641 = vadd.xlane.f32.xlu1 %v1640_v17  ;;  %1656 = vadd.xlane.f32.xlu0 %v1655_v18  ;;  %v1528_v40 = vpop.f32.mrf.mxu1  ;;  %v6010_v17 = vsub.s32 2, %v6001_v12  ;;  %v6013_v18 = vsub.s32 3, %v6001_v12  ;;  %v6022_v22 = vsub.s32 6, %v6001_v12  ;;  %v6025_v23 = vsub.s32 7, %v6001_v12 }
 0x3c4   : > { %v1592_v41 = vmax.f32 %v1534_v36, 0.0  ;;  %v1529_v42 = vadd.f32 %v1528_v40, %v1305_v3  ;;  %v1667_v39 = vsel %vm1600_vm4, %v1589_v35, 0.0  ;;  %v2759_v14 = vunpack.c.0.s8 %v2758_v11 }
 0x3c5   : > { %v5237_v45 = vpop.f32.mrf.mxu1  ;;  %v1335_v59 = vpop.permute.xlu1 %1334 }
 0x3c6   : > { %v1591_v46 = vmax.f32 %v1529_v42, 0.0  ;;  %v1544_v47 = vadd.f32 %v5237_v45, %v1320_v34  ;;  %v1676_v48 = vsel %vm1600_vm4, %v1592_v41, 0.0 }
 0x3c7   : > { %1638 = vadd.xlane.f32.xlu1 %v1637_v25  ;;  %1665 = vadd.xlane.f32.xlu0 %v1664_v26  ;;  %v1538_v49 = vpop.f32.mrf.mxu1  ;;  %v6028_v25 = vsub.s32 %v2759_v14, %v6001_v12 }
 0x3c8   : > { %v1594_v52 = vmax.f32 %v1544_v47, 0.0  ;;  %v1539_v53 = vadd.f32 %v1538_v49, %v1315_v27  ;;  %v1673_v54 = vsel %vm1600_vm4, %v1591_v46, 0.0 }
 0x3c9   : > { %v5240_v55 = vpop.f32.mrf.mxu1  ;;  %v1340_v1 = vpop.permute.xlu1 %1339 }
 0x3ca   : > { %v1593_v56 = vmax.f32 %v1539_v53, 0.0  ;;  %v1554_v57 = vadd.f32 %v5240_v55, %v1330_v50  ;;  %v1682_v58 = vsel %vm1600_vm4, %v1594_v52, 0.0 }
 0x3cb   : > { %1647 = vadd.xlane.f32.xlu1 %v1646_v31  ;;  %1662 = vadd.xlane.f32.xlu0 %v1661_v32  ;;  %v1548_v60 = vpop.f32.mrf.mxu1 }
 0x3cc   : > { %v1596_v51 = vmax.f32 %v1554_v57, 0.0  ;;  %v1549_v61 = vadd.f32 %v1548_v60, %v1325_v44  ;;  %v1679_v63 = vsel %vm1600_vm4, %v1593_v56, 0.0 }
 0x3cd   : > { %v5243_v0 = vpop.f32.mrf.mxu1 }
 0x3ce   : > { %v1595_v43 = vmax.f32 %v1549_v61, 0.0  ;;  %v1564_v2 = vadd.f32 %v5243_v0, %v1340_v1  ;;  %v1688_v3 = vsel %vm1600_vm4, %v1596_v51, 0.0 }
 0x3cf   : > { %1644 = vadd.xlane.f32.xlu1 %v1643_v37  ;;  %1671 = vadd.xlane.f32.xlu0 %v1670_v38  ;;  %v1558_v4 = vpop.f32.mrf.mxu1 }
 0x3d0   : > { %v1598_v5 = vmax.f32 %v1564_v2, 0.0  ;;  %v1559_v6 = vadd.f32 %v1558_v4, %v1335_v59  ;;  %v1685_v7 = vsel %vm1600_vm4, %v1595_v43, 0.0 }
 0x3d2   : > { %v1597_v8 = vmax.f32 %v1559_v6, 0.0  ;;  %v1694_v9 = vsel %vm1600_vm4, %v1598_v5, 0.0 }
 0x3d3   : > { %1668 = vadd.xlane.f32.xlu0 %v1667_v39 }
 0x3d4   : > { %v1691_v10 = vsel %vm1600_vm4, %v1597_v8, 0.0  ;;  %vm4526_vm4 = vcmask 1048512  }
 0x3d7   : > { %1677 = vadd.xlane.f32.xlu0 %v1676_v48 }
 0x3db   : > { %1674 = vadd.xlane.f32.xlu0 %v1673_v54 }
 0x3df   : > { %1683 = vadd.xlane.f32.xlu0 %v1682_v58 }
 0x3e3   : > { %1680 = vadd.xlane.f32.xlu0 %v1679_v63 }
 0x3e7   : > { %1689 = vadd.xlane.f32.xlu0 %v1688_v3 }
 0x3eb   : > { %1686 = vadd.xlane.f32.xlu0 %v1685_v7 }
 0x3ef   : > { %1695 = vadd.xlane.f32.xlu0 %v1694_v9 }
 0x3f3   : > { %1692 = vadd.xlane.f32.xlu0 %v1691_v10 }
 0x420   : > { %v1606_v24 = vpop.xlane.xlu1 %1605 }
 0x421   : > { %v1764_v26 = vrot.slane %v1606_v24, %v6004_v15  ;;  %v1768_v27 = vrot.slane %v1606_v24, %v6007_v16  ;;  %v1772_v28 = vrot.slane %v1606_v24, %v6010_v17  ;;  %v1776_v20 = vrot.slane %v1606_v24, %v6013_v18 }
 0x422   : > { %v1603_v29 = vpop.xlane.xlu0 %1602  ;;  %v1780_v30 = vrot.slane %v1606_v24, %v6016_v19  ;;  %v1784_v31 = vrot.slane %v1606_v24, %v6019_v21  ;;  %v1788_v32 = vrot.slane %v1606_v24, %v6022_v22  ;;  %v1792_v33 = vrot.slane %v1606_v24, %v6025_v23 }
 0x423   : > { %v2802_v34 = vcombine.low %v1764_v26, %v1768_v27  ;;  %v2803_v35 = vcombine.low %v1772_v28, %v1776_v20  ;;  %v1732_v36 = vrot.slane %v1603_v29, %v6004_v15  ;;  %v1736_v37 = vrot.slane %v1603_v29, %v6007_v16 }
 0x424   : > { %v1612_v38 = vpop.xlane.xlu1 %1611  ;;  %v2804_v40 = vcombine.low %v1780_v30, %v1784_v31  ;;  %v2805_v41 = vcombine.low %v1788_v32, %v1792_v33  ;;  %v1740_v42 = vrot.slane %v1603_v29, %v6010_v17  ;;  %v1744_v39 = vrot.slane %v1603_v29, %v6013_v18 }
 0x425   : > { %v2812_v44 = vrot.slane %v2802_v34, %v6028_v25  ;;  %v2819_v45 = vrot.slane %v2803_v35, %v6028_v25  ;;  %v1748_v46 = vrot.slane %v1603_v29, %v6016_v19  ;;  %v1752_v47 = vrot.slane %v1603_v29, %v6019_v21 }
 0x426   : > { %v2826_v48 = vrot.slane %v2804_v40, %v6028_v25  ;;  %v2833_v49 = vrot.slane %v2805_v41, %v6028_v25  ;;  %v1756_v50 = vrot.slane %v1603_v29, %v6022_v22  ;;  %v1760_v52 = vrot.slane %v1603_v29, %v6025_v23 }
 0x427   : > { %v2834_v53 = vcombine.low %v2812_v44, %v2819_v45  ;;  %v2753_v54 = vcombine.low %v1732_v36, %v1736_v37  ;;  %v2754_v55 = vcombine.low %v1740_v42, %v1744_v39  ;;  %v2755_v56 = vcombine.low %v1748_v46, %v1752_v47 }
 0x428   : > { %v1609_v57 = vpop.xlane.xlu1 %1608  ;;  %v2835_v58 = vcombine.low %v2826_v48, %v2833_v49  ;;  %v2756_v59 = vcombine.low %v1756_v50, %v1760_v52  ;;  %v1828_v60 = vrot.slane %v1612_v38, %v6004_v15  ;;  %v1832_v51 = vrot.slane %v1612_v38, %v6007_v16 }
 0x429   : > { %v2842_v61 = vrot.slane %v2834_v53, %v6028_v25  ;;  %v2763_v63 = vrot.slane %v2753_v54, %v6028_v25  ;;  %v2770_v0 = vrot.slane %v2754_v55, %v6028_v25  ;;  %v2777_v1 = vrot.slane %v2755_v56, %v6028_v25 }
 0x42a   : > { %v2849_v43 = vrot.slane %v2835_v58, %v6028_v25  ;;  %v2784_v2 = vrot.slane %v2756_v59, %v6028_v25  ;;  %v1836_v3 = vrot.slane %v1612_v38, %v6010_v17  ;;  %v1840_v4 = vrot.slane %v1612_v38, %v6013_v18 }
 0x42b   : > { %v2785_v5 = vcombine.low %v2763_v63, %v2770_v0  ;;  %v1844_v6 = vrot.slane %v1612_v38, %v6016_v19  ;;  %v1848_v7 = vrot.slane %v1612_v38, %v6019_v21  ;;  %v1852_v8 = vrot.slane %v1612_v38, %v6022_v22 }
 0x42c   : > { %v1618_v9 = vpop.xlane.xlu1 %1617  ;;  %v2850_v10 = vcombine.low %v2842_v61, %v2849_v43  ;;  %v2786_v62 = vcombine.low %v2777_v1, %v2784_v2  ;;  %v1856_v11 = vrot.slane %v1612_v38, %v6025_v23  ;;  %v2900_v14 = vcombine.low %v1828_v60, %v1832_v51 }
 0x42d   : > { %v2793_v24 = vrot.slane %v2785_v5, %v6028_v25  ;;  %v2901_v26 = vcombine.low %v1836_v3, %v1840_v4  ;;  %v2902_v27 = vcombine.low %v1844_v6, %v1848_v7  ;;  %v1796_v28 = vrot.slane %v1609_v57, %v6004_v15 }
 0x42e   : > { %4325 = vperm.xlu0 %5338, %v2850_v10   ;;  %v2800_v20 = vrot.slane %v2786_v62, %v6028_v25  ;;  %v2903_v29 = vcombine.low %v1852_v8, %v1856_v11  ;;  %v2910_v30 = vrot.slane %v2900_v14, %v6028_v25  ;;  %v1800_v31 = vrot.slane %v1609_v57, %v6007_v16 }
 0x42f   : > { %v2917_v32 = vrot.slane %v2901_v26, %v6028_v25  ;;  %v2924_v33 = vrot.slane %v2902_v27, %v6028_v25  ;;  %v1804_v34 = vrot.slane %v1609_v57, %v6010_v17  ;;  %v1808_v35 = vrot.slane %v1609_v57, %v6013_v18 }
 0x430   : > { %v2801_v36 = vcombine.low %v2793_v24, %v2800_v20  ;;  %v2931_v37 = vrot.slane %v2903_v29, %v6028_v25  ;;  %v1812_v38 = vrot.slane %v1609_v57, %v6016_v19  ;;  %v1816_v40 = vrot.slane %v1609_v57, %v6019_v21  ;;  %v1615_v45 = vpop.xlane.xlu1 %1614 }
 0x431   : > { %v2932_v41 = vcombine.low %v2910_v30, %v2917_v32  ;;  %v1820_v42 = vrot.slane %v1609_v57, %v6022_v22  ;;  %v1824_v39 = vrot.slane %v1609_v57, %v6025_v23  ;;  %v2851_v44 = vcombine.low %v1796_v28, %v1800_v31 }
 0x432   : > { %4322 = vperm.xlu1 %5339, %v2801_v36   ;;  %v2933_v46 = vcombine.low %v2924_v33, %v2931_v37  ;;  %v2852_v47 = vcombine.low %v1804_v34, %v1808_v35  ;;  %v2853_v48 = vcombine.low %v1812_v38, %v1816_v40  ;;  %v1892_v49 = vrot.slane %v1618_v9, %v6004_v15 }
 0x433   : > { %v2940_v50 = vrot.slane %v2932_v41, %v6028_v25  ;;  %v2854_v52 = vcombine.low %v1820_v42, %v1824_v39  ;;  %v2861_v53 = vrot.slane %v2851_v44, %v6028_v25  ;;  %v1896_v54 = vrot.slane %v1618_v9, %v6007_v16 }
 0x434   : > { %v2947_v55 = vrot.slane %v2933_v46, %v6028_v25  ;;  %v2868_v56 = vrot.slane %v2852_v47, %v6028_v25  ;;  %v2875_v57 = vrot.slane %v2853_v48, %v6028_v25  ;;  %v1900_v58 = vrot.slane %v1618_v9, %v6010_v17  ;;  %v1624_v6 = vpop.xlane.xlu1 %1623 }
 0x435   : > { %v2882_v59 = vrot.slane %v2854_v52, %v6028_v25  ;;  %v1904_v60 = vrot.slane %v1618_v9, %v6013_v18  ;;  %v1908_v51 = vrot.slane %v1618_v9, %v6016_v19  ;;  %v1912_v61 = vrot.slane %v1618_v9, %v6019_v21 }
 0x436   : > { %v2948_v63 = vcombine.low %v2940_v50, %v2947_v55  ;;  %v2883_v0 = vcombine.low %v2861_v53, %v2868_v56  ;;  %v1916_v1 = vrot.slane %v1618_v9, %v6022_v22  ;;  %v1920_v43 = vrot.slane %v1618_v9, %v6025_v23 }
 0x437   : > { %v2884_v2 = vcombine.low %v2875_v57, %v2882_v59  ;;  %v2998_v3 = vcombine.low %v1892_v49, %v1896_v54  ;;  %v2999_v4 = vcombine.low %v1900_v58, %v1904_v60  ;;  %v3000_v5 = vcombine.low %v1908_v51, %v1912_v61 }
 0x438   : > { %4331 = vperm.xlu0 %5338, %v2948_v63   ;;  %v2891_v7 = vrot.slane %v2883_v0, %v6028_v25  ;;  %v3001_v8 = vcombine.low %v1916_v1, %v1920_v43  ;;  %v1860_v10 = vrot.slane %v1615_v45, %v6004_v15  ;;  %v1864_v62 = vrot.slane %v1615_v45, %v6007_v16  ;;  %v1621_v42 = vpop.xlane.xlu1 %1620 }
 0x439   : > { %v2898_v11 = vrot.slane %v2884_v2, %v6028_v25  ;;  %v3008_v14 = vrot.slane %v2998_v3, %v6028_v25  ;;  %v3015_v24 = vrot.slane %v2999_v4, %v6028_v25  ;;  %v3022_v9 = vrot.slane %v3000_v5, %v6028_v25 }
 0x43a   : > { %v3029_v26 = vrot.slane %v3001_v8, %v6028_v25  ;;  %v1868_v27 = vrot.slane %v1615_v45, %v6010_v17  ;;  %v1872_v28 = vrot.slane %v1615_v45, %v6013_v18  ;;  %v1876_v20 = vrot.slane %v1615_v45, %v6016_v19 }
 0x43b   : > { %v2899_v29 = vcombine.low %v2891_v7, %v2898_v11  ;;  %v3030_v30 = vcombine.low %v3008_v14, %v3015_v24  ;;  %v1880_v31 = vrot.slane %v1615_v45, %v6019_v21  ;;  %v1884_v32 = vrot.slane %v1615_v45, %v6022_v22 }
 0x43c   : > { %v3031_v33 = vcombine.low %v3022_v9, %v3029_v26  ;;  %v1888_v34 = vrot.slane %v1615_v45, %v6025_v23  ;;  %v2949_v35 = vcombine.low %v1860_v10, %v1864_v62  ;;  %v2950_v36 = vcombine.low %v1868_v27, %v1872_v28  ;;  %v1630_v3 = vpop.xlane.xlu1 %1629 }
 0x43d   : > { %4328 = vperm.xlu0 %5338, %v2899_v29   ;;  %v3038_v37 = vrot.slane %v3030_v30, %v6028_v25  ;;  %v2951_v38 = vcombine.low %v1876_v20, %v1880_v31  ;;  %v1956_v40 = vrot.slane %v1624_v6, %v6004_v15  ;;  %v1960_v41 = vrot.slane %v1624_v6, %v6007_v16 }
 0x43e   : > { %v3045_v39 = vrot.slane %v3031_v33, %v6028_v25  ;;  %v2952_v44 = vcombine.low %v1884_v32, %v1888_v34  ;;  %v2959_v46 = vrot.slane %v2949_v35, %v6028_v25  ;;  %v2966_v47 = vrot.slane %v2950_v36, %v6028_v25 }
 0x43f   : > { %v2973_v45 = vrot.slane %v2951_v38, %v6028_v25  ;;  %v1964_v48 = vrot.slane %v1624_v6, %v6010_v17  ;;  %v1968_v49 = vrot.slane %v1624_v6, %v6013_v18  ;;  %v1972_v50 = vrot.slane %v1624_v6, %v6016_v19 }
 0x440   : > { %v3046_v52 = vcombine.low %v3038_v37, %v3045_v39  ;;  %v2980_v53 = vrot.slane %v2952_v44, %v6028_v25  ;;  %v2981_v54 = vcombine.low %v2959_v46, %v2966_v47  ;;  %v1976_v55 = vrot.slane %v1624_v6, %v6019_v21  ;;  %v1627_v38 = vpop.xlane.xlu1 %1626 }
 0x441   : > { %v1980_v56 = vrot.slane %v1624_v6, %v6022_v22  ;;  %v1984_v57 = vrot.slane %v1624_v6, %v6025_v23  ;;  %v3096_v58 = vcombine.low %v1956_v40, %v1960_v41  ;;  %v3097_v59 = vcombine.low %v1964_v48, %v1968_v49 }
 0x442   : > { %4337 = vperm.xlu0 %5338, %v3046_v52   ;;  %v2982_v60 = vcombine.low %v2973_v45, %v2980_v53  ;;  %v2989_v51 = vrot.slane %v2981_v54, %v6028_v25  ;;  %v3098_v61 = vcombine.low %v1972_v50, %v1976_v55  ;;  %v1924_v63 = vrot.slane %v1621_v42, %v6004_v15 }
 0x443   : > { %v3099_v0 = vcombine.low %v1980_v56, %v1984_v57  ;;  %v3106_v1 = vrot.slane %v3096_v58, %v6028_v25  ;;  %v3113_v43 = vrot.slane %v3097_v59, %v6028_v25  ;;  %v1928_v2 = vrot.slane %v1621_v42, %v6007_v16 }
 0x444   : > { %v2996_v4 = vrot.slane %v2982_v60, %v6028_v25  ;;  %v3120_v5 = vrot.slane %v3098_v61, %v6028_v25  ;;  %v1932_v6 = vrot.slane %v1621_v42, %v6010_v17  ;;  %v1936_v7 = vrot.slane %v1621_v42, %v6013_v18 }
 0x445   : > { %v3127_v8 = vrot.slane %v3099_v0, %v6028_v25  ;;  %v3128_v10 = vcombine.low %v3106_v1, %v3113_v43  ;;  %v1940_v62 = vrot.slane %v1621_v42, %v6016_v19  ;;  %v1944_v11 = vrot.slane %v1621_v42, %v6019_v21 }
 0x446   : > { %v2997_v14 = vcombine.low %v2989_v51, %v2996_v4  ;;  %v1948_v24 = vrot.slane %v1621_v42, %v6022_v22  ;;  %v1952_v9 = vrot.slane %v1621_v42, %v6025_v23  ;;  %v3047_v26 = vcombine.low %v1924_v63, %v1928_v2  ;;  %v1654_v51 = vpop.xlane.xlu0 %1653 }
 0x447   : > { %v3129_v27 = vcombine.low %v3120_v5, %v3127_v8  ;;  %v3136_v28 = vrot.slane %v3128_v10, %v6028_v25  ;;  %v3048_v20 = vcombine.low %v1932_v6, %v1936_v7  ;;  %v3049_v29 = vcombine.low %v1940_v62, %v1944_v11 }
 0x448   : > { %4334 = vperm.xlu0 %5338, %v2997_v14   ;;  %v3050_v30 = vcombine.low %v1948_v24, %v1952_v9  ;;  %v3057_v31 = vrot.slane %v3047_v26, %v6028_v25  ;;  %v2020_v32 = vrot.slane %v1630_v3, %v6004_v15  ;;  %v2024_v33 = vrot.slane %v1630_v3, %v6007_v16 }
 0x449   : > { %v3143_v34 = vrot.slane %v3129_v27, %v6028_v25  ;;  %v3064_v35 = vrot.slane %v3048_v20, %v6028_v25  ;;  %v3071_v36 = vrot.slane %v3049_v29, %v6028_v25  ;;  %v2028_v37 = vrot.slane %v1630_v3, %v6010_v17 }
 0x44a   : > { %v3078_v40 = vrot.slane %v3050_v30, %v6028_v25  ;;  %v2032_v41 = vrot.slane %v1630_v3, %v6013_v18  ;;  %v2036_v42 = vrot.slane %v1630_v3, %v6016_v19  ;;  %v2040_v39 = vrot.slane %v1630_v3, %v6019_v21 }
 0x44b   : > { %v3144_v44 = vcombine.low %v3136_v28, %v3143_v34  ;;  %v3079_v46 = vcombine.low %v3057_v31, %v3064_v35  ;;  %v2044_v47 = vrot.slane %v1630_v3, %v6022_v22  ;;  %v2048_v45 = vrot.slane %v1630_v3, %v6025_v23  ;;  %v1636_v28 = vpop.xlane.xlu1 %1635 }
 0x44c   : > { %v3080_v48 = vcombine.low %v3071_v36, %v3078_v40  ;;  %v3194_v49 = vcombine.low %v2020_v32, %v2024_v33  ;;  %v3195_v50 = vcombine.low %v2028_v37, %v2032_v41  ;;  %v3196_v52 = vcombine.low %v2036_v42, %v2040_v39 }
 0x44d   : > { %4343 = vperm.xlu0 %5338, %v3144_v44   ;;  %v3087_v53 = vrot.slane %v3079_v46, %v6028_v25  ;;  %v3197_v54 = vcombine.low %v2044_v47, %v2048_v45  ;;  %v1988_v55 = vrot.slane %v1627_v38, %v6004_v15  ;;  %v1992_v56 = vrot.slane %v1627_v38, %v6007_v16 }
 0x44e   : > { %v3094_v57 = vrot.slane %v3080_v48, %v6028_v25  ;;  %v3204_v58 = vrot.slane %v3194_v49, %v6028_v25  ;;  %v3211_v59 = vrot.slane %v3195_v50, %v6028_v25  ;;  %v3218_v60 = vrot.slane %v3196_v52, %v6028_v25 }
 0x44f   : > { %v3225_v61 = vrot.slane %v3197_v54, %v6028_v25  ;;  %v1996_v63 = vrot.slane %v1627_v38, %v6010_v17  ;;  %v2000_v0 = vrot.slane %v1627_v38, %v6013_v18  ;;  %v2004_v1 = vrot.slane %v1627_v38, %v6016_v19  ;;  %v1651_v54 = vpop.xlane.xlu0 %1650 }
 0x450   : > { %v3095_v43 = vcombine.low %v3087_v53, %v3094_v57  ;;  %v3226_v2 = vcombine.low %v3204_v58, %v3211_v59  ;;  %v2008_v3 = vrot.slane %v1627_v38, %v6019_v21  ;;  %v2012_v4 = vrot.slane %v1627_v38, %v6022_v22 }
 0x451   : > { %v3227_v5 = vcombine.low %v3218_v60, %v3225_v61  ;;  %v2016_v6 = vrot.slane %v1627_v38, %v6025_v23  ;;  %v3145_v7 = vcombine.low %v1988_v55, %v1992_v56  ;;  %v3146_v8 = vcombine.low %v1996_v63, %v2000_v0 }
 0x452   : > { %4340 = vperm.xlu0 %5338, %v3095_v43   ;;  %v3234_v10 = vrot.slane %v3226_v2, %v6028_v25  ;;  %v3147_v62 = vcombine.low %v2004_v1, %v2008_v3  ;;  %v2276_v11 = vrot.slane %v1654_v51, %v6004_v15  ;;  %v2280_v14 = vrot.slane %v1654_v51, %v6007_v16 }
 0x453   : > { %v3241_v24 = vrot.slane %v3227_v5, %v6028_v25  ;;  %v3148_v9 = vcombine.low %v2012_v4, %v2016_v6  ;;  %v3155_v26 = vrot.slane %v3145_v7, %v6028_v25  ;;  %v3162_v27 = vrot.slane %v3146_v8, %v6028_v25 }
 0x454   : > { %v3169_v20 = vrot.slane %v3147_v62, %v6028_v25  ;;  %v2284_v29 = vrot.slane %v1654_v51, %v6010_v17  ;;  %v2288_v30 = vrot.slane %v1654_v51, %v6013_v18  ;;  %v2292_v31 = vrot.slane %v1654_v51, %v6016_v19  ;;  %v1633_v62 = vpop.xlane.xlu1 %1632 }
 0x455   : > { %v3242_v32 = vcombine.low %v3234_v10, %v3241_v24  ;;  %v3176_v33 = vrot.slane %v3148_v9, %v6028_v25  ;;  %v3177_v34 = vcombine.low %v3155_v26, %v3162_v27  ;;  %v2296_v35 = vrot.slane %v1654_v51, %v6019_v21 }
 0x456   : > { %v2300_v36 = vrot.slane %v1654_v51, %v6022_v22  ;;  %v2304_v37 = vrot.slane %v1654_v51, %v6025_v23  ;;  %v3586_v38 = vcombine.low %v2276_v11, %v2280_v14  ;;  %v3587_v40 = vcombine.low %v2284_v29, %v2288_v30 }
 0x457   : > { %4349 = vperm.xlu0 %5338, %v3242_v32   ;;  %v3178_v41 = vcombine.low %v3169_v20, %v3176_v33  ;;  %v3185_v42 = vrot.slane %v3177_v34, %v6028_v25  ;;  %v3588_v39 = vcombine.low %v2292_v31, %v2296_v35  ;;  %v2084_v44 = vrot.slane %v1636_v28, %v6004_v15 }
 0x458   : > { %v3589_v46 = vcombine.low %v2300_v36, %v2304_v37  ;;  %v3596_v47 = vrot.slane %v3586_v38, %v6028_v25  ;;  %v3603_v45 = vrot.slane %v3587_v40, %v6028_v25  ;;  %v2088_v48 = vrot.slane %v1636_v28, %v6007_v16 }
 0x459   : > { %v3192_v49 = vrot.slane %v3178_v41, %v6028_v25  ;;  %v3610_v50 = vrot.slane %v3588_v39, %v6028_v25  ;;  %v2092_v52 = vrot.slane %v1636_v28, %v6010_v17  ;;  %v2096_v53 = vrot.slane %v1636_v28, %v6013_v18 }
 0x45a   : > { %v3617_v55 = vrot.slane %v3589_v46, %v6028_v25  ;;  %v3618_v56 = vcombine.low %v3596_v47, %v3603_v45  ;;  %v2100_v57 = vrot.slane %v1636_v28, %v6016_v19  ;;  %v2104_v58 = vrot.slane %v1636_v28, %v6019_v21 }
 0x45b   : > { %v3193_v59 = vcombine.low %v3185_v42, %v3192_v49  ;;  %v2108_v60 = vrot.slane %v1636_v28, %v6022_v22  ;;  %v2112_v51 = vrot.slane %v1636_v28, %v6025_v23  ;;  %v3292_v61 = vcombine.low %v2084_v44, %v2088_v48  ;;  %v1660_v42 = vpop.xlane.xlu0 %1659 }
 0x45c   : > { %v3619_v63 = vcombine.low %v3610_v50, %v3617_v55  ;;  %v3626_v0 = vrot.slane %v3618_v56, %v6028_v25  ;;  %v3293_v1 = vcombine.low %v2092_v52, %v2096_v53  ;;  %v3294_v43 = vcombine.low %v2100_v57, %v2104_v58 }
 0x45d   : > { %4346 = vperm.xlu0 %5338, %v3193_v59   ;;  %v3295_v2 = vcombine.low %v2108_v60, %v2112_v51  ;;  %v3302_v3 = vrot.slane %v3292_v61, %v6028_v25  ;;  %v2244_v4 = vrot.slane %v1651_v54, %v6004_v15  ;;  %v2248_v5 = vrot.slane %v1651_v54, %v6007_v16 }
 0x45e   : > { %v3633_v6 = vrot.slane %v3619_v63, %v6028_v25  ;;  %v3309_v7 = vrot.slane %v3293_v1, %v6028_v25  ;;  %v3316_v8 = vrot.slane %v3294_v43, %v6028_v25  ;;  %v2252_v10 = vrot.slane %v1651_v54, %v6010_v17 }
 0x45f   : > { %v3323_v11 = vrot.slane %v3295_v2, %v6028_v25  ;;  %v2256_v14 = vrot.slane %v1651_v54, %v6013_v18  ;;  %v2260_v24 = vrot.slane %v1651_v54, %v6016_v19  ;;  %v2264_v9 = vrot.slane %v1651_v54, %v6019_v21 }
 0x460   : > { %v3634_v26 = vcombine.low %v3626_v0, %v3633_v6  ;;  %v3324_v27 = vcombine.low %v3302_v3, %v3309_v7  ;;  %v2268_v28 = vrot.slane %v1651_v54, %v6022_v22  ;;  %v2272_v20 = vrot.slane %v1651_v54, %v6025_v23  ;;  %v1642_v0 = vpop.xlane.xlu1 %1641 }
 0x461   : > { %v3325_v29 = vcombine.low %v3316_v8, %v3323_v11  ;;  %v3537_v30 = vcombine.low %v2244_v4, %v2248_v5  ;;  %v3538_v31 = vcombine.low %v2252_v10, %v2256_v14  ;;  %v3539_v32 = vcombine.low %v2260_v24, %v2264_v9 }
 0x462   : > { %4373 = vperm.xlu1 %5339, %v3634_v26   ;;  %v3332_v33 = vrot.slane %v3324_v27, %v6028_v25  ;;  %v3540_v34 = vcombine.low %v2268_v28, %v2272_v20  ;;  %v2052_v35 = vrot.slane %v1633_v62, %v6004_v15  ;;  %v2056_v36 = vrot.slane %v1633_v62, %v6007_v16 }
 0x463   : > { %v3339_v37 = vrot.slane %v3325_v29, %v6028_v25  ;;  %v3547_v38 = vrot.slane %v3537_v30, %v6028_v25  ;;  %v3554_v40 = vrot.slane %v3538_v31, %v6028_v25  ;;  %v3561_v41 = vrot.slane %v3539_v32, %v6028_v25 }
 0x464   : > { %v3568_v39 = vrot.slane %v3540_v34, %v6028_v25  ;;  %v2060_v44 = vrot.slane %v1633_v62, %v6010_v17  ;;  %v2064_v46 = vrot.slane %v1633_v62, %v6013_v18  ;;  %v2068_v47 = vrot.slane %v1633_v62, %v6016_v19  ;;  %v1657_v34 = vpop.xlane.xlu0 %1656 }
 0x465   : > { %v3340_v45 = vcombine.low %v3332_v33, %v3339_v37  ;;  %v3569_v48 = vcombine.low %v3547_v38, %v3554_v40  ;;  %v2072_v49 = vrot.slane %v1633_v62, %v6019_v21  ;;  %v2076_v50 = vrot.slane %v1633_v62, %v6022_v22 }
 0x466   : > { %v3570_v52 = vcombine.low %v3561_v41, %v3568_v39  ;;  %v2080_v53 = vrot.slane %v1633_v62, %v6025_v23  ;;  %v3243_v54 = vcombine.low %v2052_v35, %v2056_v36  ;;  %v3244_v55 = vcombine.low %v2060_v44, %v2064_v46 }
 0x467   : > { %4355 = vperm.xlu0 %5338, %v3340_v45   ;;  %v3577_v56 = vrot.slane %v3569_v48, %v6028_v25  ;;  %v3245_v57 = vcombine.low %v2068_v47, %v2072_v49  ;;  %v2340_v58 = vrot.slane %v1660_v42, %v6004_v15  ;;  %v2344_v59 = vrot.slane %v1660_v42, %v6007_v16 }
 0x468   : > { %v3584_v60 = vrot.slane %v3570_v52, %v6028_v25  ;;  %v3246_v51 = vcombine.low %v2076_v50, %v2080_v53  ;;  %v3253_v61 = vrot.slane %v3243_v54, %v6028_v25  ;;  %v3260_v63 = vrot.slane %v3244_v55, %v6028_v25 }
 0x469   : > { %v3267_v1 = vrot.slane %v3245_v57, %v6028_v25  ;;  %v2348_v43 = vrot.slane %v1660_v42, %v6010_v17  ;;  %v2352_v2 = vrot.slane %v1660_v42, %v6013_v18  ;;  %v2356_v3 = vrot.slane %v1660_v42, %v6016_v19  ;;  %v1639_v57 = vpop.xlane.xlu1 %1638 }
 0x46a   : > { %v3585_v4 = vcombine.low %v3577_v56, %v3584_v60  ;;  %v3274_v5 = vrot.slane %v3246_v51, %v6028_v25  ;;  %v3275_v6 = vcombine.low %v3253_v61, %v3260_v63  ;;  %v2360_v7 = vrot.slane %v1660_v42, %v6019_v21 }
 0x46b   : > { %v2364_v8 = vrot.slane %v1660_v42, %v6022_v22  ;;  %v2368_v10 = vrot.slane %v1660_v42, %v6025_v23  ;;  %v3684_v62 = vcombine.low %v2340_v58, %v2344_v59  ;;  %v3685_v11 = vcombine.low %v2348_v43, %v2352_v2  ;;  %v1666_v43 = vpop.xlane.xlu0 %1665 }
 0x46c   : > { %4370 = vperm.xlu1 %5339, %v3585_v4   ;;  %v3276_v14 = vcombine.low %v3267_v1, %v3274_v5  ;;  %v3283_v24 = vrot.slane %v3275_v6, %v6028_v25  ;;  %v3686_v9 = vcombine.low %v2356_v3, %v2360_v7  ;;  %v2148_v26 = vrot.slane %v1642_v0, %v6004_v15 }
 0x46d   : > { %v3687_v27 = vcombine.low %v2364_v8, %v2368_v10  ;;  %v3694_v28 = vrot.slane %v3684_v62, %v6028_v25  ;;  %v3701_v20 = vrot.slane %v3685_v11, %v6028_v25  ;;  %v2152_v29 = vrot.slane %v1642_v0, %v6007_v16 }
 0x46e   : > { %v3290_v30 = vrot.slane %v3276_v14, %v6028_v25  ;;  %v3708_v31 = vrot.slane %v3686_v9, %v6028_v25  ;;  %v2156_v32 = vrot.slane %v1642_v0, %v6010_v17  ;;  %v2160_v33 = vrot.slane %v1642_v0, %v6013_v18 }
 0x46f   : > { %v3715_v35 = vrot.slane %v3687_v27, %v6028_v25  ;;  %v3716_v36 = vcombine.low %v3694_v28, %v3701_v20  ;;  %v2164_v37 = vrot.slane %v1642_v0, %v6016_v19  ;;  %v2168_v38 = vrot.slane %v1642_v0, %v6019_v21 }
 0x470   : > { %v3291_v40 = vcombine.low %v3283_v24, %v3290_v30  ;;  %v2172_v41 = vrot.slane %v1642_v0, %v6022_v22  ;;  %v2176_v42 = vrot.slane %v1642_v0, %v6025_v23  ;;  %v3390_v39 = vcombine.low %v2148_v26, %v2152_v29 }
 0x471   : > { %v3717_v44 = vcombine.low %v3708_v31, %v3715_v35  ;;  %v3724_v46 = vrot.slane %v3716_v36, %v6028_v25  ;;  %v3391_v47 = vcombine.low %v2156_v32, %v2160_v33  ;;  %v3392_v45 = vcombine.low %v2164_v37, %v2168_v38  ;;  %v1663_v36 = vpop.xlane.xlu0 %1662 }
 0x472   : > { %4352 = vperm.xlu0 %5338, %v3291_v40   ;;  %v3393_v48 = vcombine.low %v2172_v41, %v2176_v42  ;;  %v3400_v49 = vrot.slane %v3390_v39, %v6028_v25  ;;  %v2308_v50 = vrot.slane %v1657_v34, %v6004_v15  ;;  %v2312_v52 = vrot.slane %v1657_v34, %v6007_v16 }
 0x473   : > { %v3731_v53 = vrot.slane %v3717_v44, %v6028_v25  ;;  %v3407_v54 = vrot.slane %v3391_v47, %v6028_v25  ;;  %v3414_v55 = vrot.slane %v3392_v45, %v6028_v25  ;;  %v2316_v56 = vrot.slane %v1657_v34, %v6010_v17  ;;  %v6280_v47 = vpop.xlane.xlu1 %1647 }
 0x474   : > { %v3421_v58 = vrot.slane %v3393_v48, %v6028_v25  ;;  %v2320_v59 = vrot.slane %v1657_v34, %v6013_v18  ;;  %v2324_v60 = vrot.slane %v1657_v34, %v6016_v19  ;;  %v2328_v51 = vrot.slane %v1657_v34, %v6019_v21 }
 0x475   : > { %v3732_v61 = vcombine.low %v3724_v46, %v3731_v53  ;;  %v3422_v63 = vcombine.low %v3400_v49, %v3407_v54  ;;  %v2332_v0 = vrot.slane %v1657_v34, %v6022_v22  ;;  %v2336_v1 = vrot.slane %v1657_v34, %v6025_v23 }
 0x476   : > { %v3423_v2 = vcombine.low %v3414_v55, %v3421_v58  ;;  %v3635_v3 = vcombine.low %v2308_v50, %v2312_v52  ;;  %v3636_v4 = vcombine.low %v2316_v56, %v2320_v59  ;;  %v3637_v5 = vcombine.low %v2324_v60, %v2328_v51 }
 0x477   : > { %4379 = vperm.xlu1 %5339, %v3732_v61   ;;  %v3430_v6 = vrot.slane %v3422_v63, %v6028_v25  ;;  %v3638_v7 = vcombine.low %v2332_v0, %v2336_v1  ;;  %v2116_v8 = vrot.slane %v1639_v57, %v6004_v15  ;;  %v2120_v10 = vrot.slane %v1639_v57, %v6007_v16  ;;  %v6292_v0 = vpop.xlane.xlu0 %1671 }
 0x478   : > { %v3437_v62 = vrot.slane %v3423_v2, %v6028_v25  ;;  %v3645_v11 = vrot.slane %v3635_v3, %v6028_v25  ;;  %v3652_v14 = vrot.slane %v3636_v4, %v6028_v25  ;;  %v3659_v24 = vrot.slane %v3637_v5, %v6028_v25 }
 0x479   : > { %v3666_v9 = vrot.slane %v3638_v7, %v6028_v25  ;;  %v2124_v26 = vrot.slane %v1639_v57, %v6010_v17  ;;  %v2128_v27 = vrot.slane %v1639_v57, %v6013_v18  ;;  %v2132_v28 = vrot.slane %v1639_v57, %v6016_v19 }
 0x47a   : > { %v3438_v20 = vcombine.low %v3430_v6, %v3437_v62  ;;  %v3667_v29 = vcombine.low %v3645_v11, %v3652_v14  ;;  %v2136_v30 = vrot.slane %v1639_v57, %v6019_v21  ;;  %v2140_v31 = vrot.slane %v1639_v57, %v6022_v22 }
 0x47b   : > { %v3668_v32 = vcombine.low %v3659_v24, %v3666_v9  ;;  %v2144_v33 = vrot.slane %v1639_v57, %v6025_v23  ;;  %v3341_v34 = vcombine.low %v2116_v8, %v2120_v10  ;;  %v3342_v35 = vcombine.low %v2124_v26, %v2128_v27  ;;  %v1645_v8 = vpop.xlane.xlu1 %1644 }
 0x47c   : > { %4361 = vperm.xlu0 %5338, %v3438_v20   ;;  %v3675_v37 = vrot.slane %v3667_v29, %v6028_v25  ;;  %v3343_v38 = vcombine.low %v2132_v28, %v2136_v30  ;;  %v2404_v40 = vrot.slane %v1666_v43, %v6004_v15  ;;  %v2408_v41 = vrot.slane %v1666_v43, %v6007_v16 }
 0x47d   : > { %v3682_v42 = vrot.slane %v3668_v32, %v6028_v25  ;;  %v3344_v39 = vcombine.low %v2140_v31, %v2144_v33  ;;  %v3351_v44 = vrot.slane %v3341_v34, %v6028_v25  ;;  %v3358_v46 = vrot.slane %v3342_v35, %v6028_v25  ;;  %v6310_v35 = vpop.xlane.xlu0 %1668 }
 0x47e   : > { %v3365_v45 = vrot.slane %v3343_v38, %v6028_v25  ;;  %v2412_v48 = vrot.slane %v1666_v43, %v6010_v17  ;;  %v2416_v49 = vrot.slane %v1666_v43, %v6013_v18  ;;  %v2420_v50 = vrot.slane %v1666_v43, %v6016_v19 }
 0x47f   : > { %v3683_v52 = vcombine.low %v3675_v37, %v3682_v42  ;;  %v3372_v53 = vrot.slane %v3344_v39, %v6028_v25  ;;  %v3373_v54 = vcombine.low %v3351_v44, %v3358_v46  ;;  %v2424_v55 = vrot.slane %v1666_v43, %v6019_v21 }
 0x480   : > { %v2428_v56 = vrot.slane %v1666_v43, %v6022_v22  ;;  %v2432_v57 = vrot.slane %v1666_v43, %v6025_v23  ;;  %v3782_v58 = vcombine.low %v2404_v40, %v2408_v41  ;;  %v3783_v59 = vcombine.low %v2412_v48, %v2416_v49 }
 0x481   : > { %4376 = vperm.xlu1 %5339, %v3683_v52   ;;  %v3374_v60 = vcombine.low %v3365_v45, %v3372_v53  ;;  %v3381_v51 = vrot.slane %v3373_v54, %v6028_v25  ;;  %v3784_v61 = vcombine.low %v2420_v50, %v2424_v55  ;;  %v2372_v63 = vrot.slane %v1663_v36, %v6004_v15 }
 0x482   : > { %v3785_v1 = vcombine.low %v2428_v56, %v2432_v57  ;;  %v3792_v2 = vrot.slane %v3782_v58, %v6028_v25  ;;  %v3799_v3 = vrot.slane %v3783_v59, %v6028_v25  ;;  %v2376_v4 = vrot.slane %v1663_v36, %v6007_v16 }
 0x483   : > { %v3388_v43 = vrot.slane %v3374_v60, %v6028_v25  ;;  %v3806_v5 = vrot.slane %v3784_v61, %v6028_v25  ;;  %v2380_v6 = vrot.slane %v1663_v36, %v6010_v17  ;;  %v2384_v7 = vrot.slane %v1663_v36, %v6013_v18 }
 0x484   : > { %v3813_v10 = vrot.slane %v3785_v1, %v6028_v25  ;;  %v3814_v62 = vcombine.low %v3792_v2, %v3799_v3  ;;  %v2388_v11 = vrot.slane %v1663_v36, %v6016_v19  ;;  %v2392_v14 = vrot.slane %v1663_v36, %v6019_v21 }
 0x485   : > { %v3389_v24 = vcombine.low %v3381_v51, %v3388_v43  ;;  %v2396_v9 = vrot.slane %v1663_v36, %v6022_v22  ;;  %v2400_v26 = vrot.slane %v1663_v36, %v6025_v23  ;;  %v3733_v27 = vcombine.low %v2372_v63, %v2376_v4  ;;  %v6331_v63 = vpop.xlane.xlu0 %1677 }
 0x486   : > { %v3815_v28 = vcombine.low %v3806_v5, %v3813_v10  ;;  %v3822_v20 = vrot.slane %v3814_v62, %v6028_v25  ;;  %v3734_v29 = vcombine.low %v2380_v6, %v2384_v7  ;;  %v3735_v30 = vcombine.low %v2388_v11, %v2392_v14 }
 0x487   : > { %4358 = vperm.xlu0 %5338, %v3389_v24   ;;  %v3736_v31 = vcombine.low %v2396_v9, %v2400_v26  ;;  %v3743_v32 = vrot.slane %v3733_v27, %v6028_v25  ;;  %v2180_v33 = vrot.slane %v1645_v8, %v6004_v15  ;;  %v2184_v34 = vrot.slane %v1645_v8, %v6007_v16 }
 0x488   : > { %v3829_v37 = vrot.slane %v3815_v28, %v6028_v25  ;;  %v3750_v36 = vrot.slane %v3734_v29, %v6028_v25  ;;  %v3757_v38 = vrot.slane %v3735_v30, %v6028_v25  ;;  %v2188_v40 = vrot.slane %v1645_v8, %v6010_v17 }
 0x489   : > { %v3764_v41 = vrot.slane %v3736_v31, %v6028_v25  ;;  %v2192_v42 = vrot.slane %v1645_v8, %v6013_v18  ;;  %v2196_v39 = vrot.slane %v1645_v8, %v6016_v19  ;;  %v2200_v44 = vrot.slane %v1645_v8, %v6019_v21 }
 0x48a   : > { %v3830_v46 = vcombine.low %v3822_v20, %v3829_v37  ;;  %v3765_v45 = vcombine.low %v3743_v32, %v3750_v36  ;;  %v2204_v48 = vrot.slane %v1645_v8, %v6022_v22  ;;  %v2208_v49 = vrot.slane %v1645_v8, %v6025_v23 }
 0x48b   : > { %v3766_v50 = vcombine.low %v3757_v38, %v3764_v41  ;;  %v3439_v52 = vcombine.low %v2180_v33, %v2184_v34  ;;  %v3440_v53 = vcombine.low %v2188_v40, %v2192_v42  ;;  %v3441_v54 = vcombine.low %v2196_v39, %v2200_v44  ;;  %v6361_v33 = vpop.xlane.xlu0 %1674 }
 0x48c   : > { %4385 = vperm.xlu1 %5339, %v3830_v46   ;;  %v3773_v55 = vrot.slane %v3765_v45, %v6028_v25  ;;  %v3442_v56 = vcombine.low %v2204_v48, %v2208_v49  ;;  %v2468_v57 = vrot.slane %v6292_v0, %v6004_v15  ;;  %v2472_v58 = vrot.slane %v6292_v0, %v6007_v16 }
 0x48d   : > { %v3780_v59 = vrot.slane %v3766_v50, %v6028_v25  ;;  %v3449_v60 = vrot.slane %v3439_v52, %v6028_v25  ;;  %v3456_v51 = vrot.slane %v3440_v53, %v6028_v25  ;;  %v3463_v61 = vrot.slane %v3441_v54, %v6028_v25 }
 0x48e   : > { %v3470_v1 = vrot.slane %v3442_v56, %v6028_v25  ;;  %v2476_v2 = vrot.slane %v6292_v0, %v6010_v17  ;;  %v2480_v3 = vrot.slane %v6292_v0, %v6013_v18  ;;  %v2484_v4 = vrot.slane %v6292_v0, %v6016_v19 }
 0x48f   : > { %v3781_v43 = vcombine.low %v3773_v55, %v3780_v59  ;;  %v3471_v5 = vcombine.low %v3449_v60, %v3456_v51  ;;  %v2488_v6 = vrot.slane %v6292_v0, %v6019_v21  ;;  %v2492_v7 = vrot.slane %v6292_v0, %v6022_v22 }
 0x490   : > { %v3472_v8 = vcombine.low %v3463_v61, %v3470_v1  ;;  %v2496_v10 = vrot.slane %v6292_v0, %v6025_v23  ;;  %v3880_v62 = vcombine.low %v2468_v57, %v2472_v58  ;;  %v3881_v11 = vcombine.low %v2476_v2, %v2480_v3  ;;  %v6388_v61 = vpop.xlane.xlu0 %1683 }
 0x491   : > { %4382 = vperm.xlu1 %5339, %v3781_v43   ;;  %v3479_v14 = vrot.slane %v3471_v5, %v6028_v25  ;;  %v3882_v24 = vcombine.low %v2484_v4, %v2488_v6  ;;  %v2212_v9 = vrot.slane %v6280_v47, %v6004_v15  ;;  %v2216_v26 = vrot.slane %v6280_v47, %v6007_v16 }
 0x492   : > { %v3486_v27 = vrot.slane %v3472_v8, %v6028_v25  ;;  %v3883_v28 = vcombine.low %v2492_v7, %v2496_v10  ;;  %v3890_v20 = vrot.slane %v3880_v62, %v6028_v25  ;;  %v3897_v29 = vrot.slane %v3881_v11, %v6028_v25 }
 0x493   : > { %v3904_v0 = vrot.slane %v3882_v24, %v6028_v25  ;;  %v2220_v30 = vrot.slane %v6280_v47, %v6010_v17  ;;  %v2224_v31 = vrot.slane %v6280_v47, %v6013_v18  ;;  %v2228_v32 = vrot.slane %v6280_v47, %v6016_v19 }
 0x494   : > { %v3487_v34 = vcombine.low %v3479_v14, %v3486_v27  ;;  %v3911_v37 = vrot.slane %v3883_v28, %v6028_v25  ;;  %v3912_v36 = vcombine.low %v3890_v20, %v3897_v29  ;;  %v2232_v38 = vrot.slane %v6280_v47, %v6019_v21 }
 0x495   : > { %v2236_v40 = vrot.slane %v6280_v47, %v6022_v22  ;;  %v2240_v41 = vrot.slane %v6280_v47, %v6025_v23  ;;  %v3488_v42 = vcombine.low %v2212_v9, %v2216_v26  ;;  %v3489_v39 = vcombine.low %v2220_v30, %v2224_v31 }
 0x496   : > { %4364 = vperm.xlu0 %5338, %v3487_v34   ;;  %v3913_v44 = vcombine.low %v3904_v0, %v3911_v37  ;;  %v3920_v46 = vrot.slane %v3912_v36, %v6028_v25  ;;  %v3490_v45 = vcombine.low %v2228_v32, %v2232_v38  ;;  %v2436_v48 = vrot.slane %v6310_v35, %v6004_v15  ;;  %v6416_v32 = vpop.xlane.xlu0 %1680 }
 0x497   : > { %v3491_v49 = vcombine.low %v2236_v40, %v2240_v41  ;;  %v3498_v50 = vrot.slane %v3488_v42, %v6028_v25  ;;  %v3505_v52 = vrot.slane %v3489_v39, %v6028_v25  ;;  %v2440_v53 = vrot.slane %v6310_v35, %v6007_v16 }
 0x498   : > { %v3927_v47 = vrot.slane %v3913_v44, %v6028_v25  ;;  %v3512_v54 = vrot.slane %v3490_v45, %v6028_v25  ;;  %v2444_v55 = vrot.slane %v6310_v35, %v6010_v17  ;;  %v2448_v56 = vrot.slane %v6310_v35, %v6013_v18 }
 0x499   : > { %v3519_v57 = vrot.slane %v3491_v49, %v6028_v25  ;;  %v3520_v58 = vcombine.low %v3498_v50, %v3505_v52  ;;  %v2452_v59 = vrot.slane %v6310_v35, %v6016_v19  ;;  %v2456_v60 = vrot.slane %v6310_v35, %v6019_v21 }
 0x49a   : > { %v3928_v51 = vcombine.low %v3920_v46, %v3927_v47  ;;  %v2460_v1 = vrot.slane %v6310_v35, %v6022_v22  ;;  %v2464_v2 = vrot.slane %v6310_v35, %v6025_v23  ;;  %v3831_v3 = vcombine.low %v2436_v48, %v2440_v53 }
 0x49b   : > { %v3521_v4 = vcombine.low %v3512_v54, %v3519_v57  ;;  %v3528_v43 = vrot.slane %v3520_v58, %v6028_v25  ;;  %v3832_v5 = vcombine.low %v2444_v55, %v2448_v56  ;;  %v3833_v6 = vcombine.low %v2452_v59, %v2456_v60  ;;  %v6441_v60 = vpop.xlane.xlu0 %1689 }
 0x49c   : > { %4391 = vperm.xlu1 %5339, %v3928_v51   ;;  %v3834_v7 = vcombine.low %v2460_v1, %v2464_v2  ;;  %v3841_v8 = vrot.slane %v3831_v3, %v6028_v25  ;;  %v2532_v10 = vrot.slane %v6331_v63, %v6004_v15  ;;  %v2536_v62 = vrot.slane %v6331_v63, %v6007_v16 }
 0x49d   : > { %v3535_v11 = vrot.slane %v3521_v4, %v6028_v25  ;;  %v3848_v35 = vrot.slane %v3832_v5, %v6028_v25  ;;  %v3855_v14 = vrot.slane %v3833_v6, %v6028_v25  ;;  %v2540_v24 = vrot.slane %v6331_v63, %v6010_v17 }
 0x49e   : > { %v3862_v9 = vrot.slane %v3834_v7, %v6028_v25  ;;  %v2544_v26 = vrot.slane %v6331_v63, %v6013_v18  ;;  %v2548_v27 = vrot.slane %v6331_v63, %v6016_v19  ;;  %v2552_v28 = vrot.slane %v6331_v63, %v6019_v21 }
 0x49f   : > { %v3536_v20 = vcombine.low %v3528_v43, %v3535_v11  ;;  %v3863_v29 = vcombine.low %v3841_v8, %v3848_v35  ;;  %v2556_v0 = vrot.slane %v6331_v63, %v6022_v22  ;;  %v2560_v30 = vrot.slane %v6331_v63, %v6025_v23 }
 0x4a0   : > { %v3864_v31 = vcombine.low %v3855_v14, %v3862_v9  ;;  %v3978_v34 = vcombine.low %v2532_v10, %v2536_v62  ;;  %v3979_v37 = vcombine.low %v2540_v24, %v2544_v26  ;;  %v3980_v36 = vcombine.low %v2548_v27, %v2552_v28 }
 0x4a1   : > { %4367 = vperm.xlu0 %5338, %v3536_v20   ;;  %v3871_v38 = vrot.slane %v3863_v29, %v6028_v25  ;;  %v3981_v40 = vcombine.low %v2556_v0, %v2560_v30  ;;  %v2500_v41 = vrot.slane %v6361_v33, %v6004_v15  ;;  %v2504_v42 = vrot.slane %v6361_v33, %v6007_v16  ;;  %v6467_v0 = vpop.xlane.xlu0 %1686 }
 0x4a2   : > { %v3878_v39 = vrot.slane %v3864_v31, %v6028_v25  ;;  %v3988_v63 = vrot.slane %v3978_v34, %v6028_v25  ;;  %v3995_v44 = vrot.slane %v3979_v37, %v6028_v25  ;;  %v4002_v46 = vrot.slane %v3980_v36, %v6028_v25 }
 0x4a3   : > { %v4009_v45 = vrot.slane %v3981_v40, %v6028_v25  ;;  %v2508_v48 = vrot.slane %v6361_v33, %v6010_v17  ;;  %v2512_v49 = vrot.slane %v6361_v33, %v6013_v18  ;;  %v2516_v50 = vrot.slane %v6361_v33, %v6016_v19 }
 0x4a4   : > { %v3879_v52 = vcombine.low %v3871_v38, %v3878_v39  ;;  %v4010_v53 = vcombine.low %v3988_v63, %v3995_v44  ;;  %v2520_v47 = vrot.slane %v6361_v33, %v6019_v21  ;;  %v2524_v54 = vrot.slane %v6361_v33, %v6022_v22 }
 0x4a5   : > { %v4011_v55 = vcombine.low %v4002_v46, %v4009_v45  ;;  %v2528_v56 = vrot.slane %v6361_v33, %v6025_v23  ;;  %v3929_v57 = vcombine.low %v2500_v41, %v2504_v42  ;;  %v3930_v58 = vcombine.low %v2508_v48, %v2512_v49 }
 0x4a6   : > { %4388 = vperm.xlu1 %5339, %v3879_v52   ;;  %v4018_v59 = vrot.slane %v4010_v53, %v6028_v25  ;;  %v3931_v51 = vcombine.low %v2516_v50, %v2520_v47  ;;  %v2596_v1 = vrot.slane %v6388_v61, %v6004_v15  ;;  %v2600_v2 = vrot.slane %v6388_v61, %v6007_v16 }
 0x4a7   : > { %v4025_v3 = vrot.slane %v4011_v55, %v6028_v25  ;;  %v3932_v4 = vcombine.low %v2524_v54, %v2528_v56  ;;  %v3939_v43 = vrot.slane %v3929_v57, %v6028_v25  ;;  %v3946_v33 = vrot.slane %v3930_v58, %v6028_v25  ;;  %v6495_v58 = vpop.xlane.xlu0 %1695 }
 0x4a8   : > { %v3953_v5 = vrot.slane %v3931_v51, %v6028_v25  ;;  %v2604_v6 = vrot.slane %v6388_v61, %v6010_v17  ;;  %v2608_v7 = vrot.slane %v6388_v61, %v6013_v18  ;;  %v2612_v8 = vrot.slane %v6388_v61, %v6016_v19 }
 0x4a9   : > { %v4026_v10 = vcombine.low %v4018_v59, %v4025_v3  ;;  %v3960_v62 = vrot.slane %v3932_v4, %v6028_v25  ;;  %v3961_v11 = vcombine.low %v3939_v43, %v3946_v33  ;;  %v2616_v35 = vrot.slane %v6388_v61, %v6019_v21 }
 0x4aa   : > { %v2620_v14 = vrot.slane %v6388_v61, %v6022_v22  ;;  %v2624_v24 = vrot.slane %v6388_v61, %v6025_v23  ;;  %v4076_v9 = vcombine.low %v2596_v1, %v2600_v2  ;;  %v4077_v26 = vcombine.low %v2604_v6, %v2608_v7 }
 0x4ab   : > { %4397 = vperm.xlu1 %5339, %v4026_v10   ;;  %v3962_v27 = vcombine.low %v3953_v5, %v3960_v62  ;;  %v3969_v28 = vrot.slane %v3961_v11, %v6028_v25  ;;  %v4078_v20 = vcombine.low %v2612_v8, %v2616_v35  ;;  %v2564_v29 = vrot.slane %v6416_v32, %v6004_v15 }
 0x4ac   : > { %v4079_v30 = vcombine.low %v2620_v14, %v2624_v24  ;;  %v4086_v31 = vrot.slane %v4076_v9, %v6028_v25  ;;  %v4093_v34 = vrot.slane %v4077_v26, %v6028_v25  ;;  %v2568_v61 = vrot.slane %v6416_v32, %v6007_v16 }
 0x4ad   : > { %v3976_v37 = vrot.slane %v3962_v27, %v6028_v25  ;;  %v4100_v36 = vrot.slane %v4078_v20, %v6028_v25  ;;  %v2572_v38 = vrot.slane %v6416_v32, %v6010_v17  ;;  %v2576_v40 = vrot.slane %v6416_v32, %v6013_v18 }
 0x4ae   : > { %v4107_v41 = vrot.slane %v4079_v30, %v6028_v25  ;;  %v4108_v42 = vcombine.low %v4086_v31, %v4093_v34  ;;  %v2580_v39 = vrot.slane %v6416_v32, %v6016_v19  ;;  %v2584_v63 = vrot.slane %v6416_v32, %v6019_v21 }
 0x4af   : > { %v3977_v44 = vcombine.low %v3969_v28, %v3976_v37  ;;  %v2588_v46 = vrot.slane %v6416_v32, %v6022_v22  ;;  %v2592_v45 = vrot.slane %v6416_v32, %v6025_v23  ;;  %v4027_v48 = vcombine.low %v2564_v29, %v2568_v61  ;;  %v1693_v28 = vpop.xlane.xlu0 %1692 }
 0x4b0   : > { %v4109_v49 = vcombine.low %v4100_v36, %v4107_v41  ;;  %v4116_v50 = vrot.slane %v4108_v42, %v6028_v25  ;;  %v4028_v52 = vcombine.low %v2572_v38, %v2576_v40  ;;  %v4029_v53 = vcombine.low %v2580_v39, %v2584_v63 }
 0x4b1   : > { %4394 = vperm.xlu1 %5339, %v3977_v44   ;;  %v4030_v47 = vcombine.low %v2588_v46, %v2592_v45  ;;  %v4037_v54 = vrot.slane %v4027_v48, %v6028_v25  ;;  %v2660_v55 = vrot.slane %v6441_v60, %v6004_v15  ;;  %v2664_v56 = vrot.slane %v6441_v60, %v6007_v16 }
 0x4b2   : > { %v4123_v57 = vrot.slane %v4109_v49, %v6028_v25  ;;  %v4044_v32 = vrot.slane %v4028_v52, %v6028_v25  ;;  %v4051_v59 = vrot.slane %v4029_v53, %v6028_v25  ;;  %v2668_v51 = vrot.slane %v6441_v60, %v6010_v17 }
 0x4b3   : > { %v4058_v1 = vrot.slane %v4030_v47, %v6028_v25  ;;  %v2672_v2 = vrot.slane %v6441_v60, %v6013_v18  ;;  %v2676_v3 = vrot.slane %v6441_v60, %v6016_v19  ;;  %v2680_v4 = vrot.slane %v6441_v60, %v6019_v21 }
 0x4b4   : > { %v4124_v43 = vcombine.low %v4116_v50, %v4123_v57  ;;  %v4059_v33 = vcombine.low %v4037_v54, %v4044_v32  ;;  %v2684_v5 = vrot.slane %v6441_v60, %v6022_v22  ;;  %v2688_v6 = vrot.slane %v6441_v60, %v6025_v23 }
 0x4b5   : > { %v4060_v7 = vcombine.low %v4051_v59, %v4058_v1  ;;  %v4174_v8 = vcombine.low %v2660_v55, %v2664_v56  ;;  %v4175_v10 = vcombine.low %v2668_v51, %v2672_v2  ;;  %v4176_v62 = vcombine.low %v2676_v3, %v2680_v4 }
 0x4b6   : > { %4403 = vperm.xlu1 %5339, %v4124_v43   ;;  %v4067_v11 = vrot.slane %v4059_v33, %v6028_v25  ;;  %v4177_v35 = vcombine.low %v2684_v5, %v2688_v6  ;;  %v2628_v14 = vrot.slane %v6467_v0, %v6004_v15  ;;  %v2632_v24 = vrot.slane %v6467_v0, %v6007_v16 }
 0x4b7   : > { %v4074_v9 = vrot.slane %v4060_v7, %v6028_v25  ;;  %v4184_v26 = vrot.slane %v4174_v8, %v6028_v25  ;;  %v4191_v60 = vrot.slane %v4175_v10, %v6028_v25  ;;  %v4198_v27 = vrot.slane %v4176_v62, %v6028_v25 }
 0x4b8   : > { %v4205_v20 = vrot.slane %v4177_v35, %v6028_v25  ;;  %v2636_v29 = vrot.slane %v6467_v0, %v6010_v17  ;;  %v2640_v30 = vrot.slane %v6467_v0, %v6013_v18  ;;  %v2644_v31 = vrot.slane %v6467_v0, %v6016_v19 }
 0x4b9   : > { %v4075_v34 = vcombine.low %v4067_v11, %v4074_v9  ;;  %v4206_v61 = vcombine.low %v4184_v26, %v4191_v60  ;;  %v2648_v37 = vrot.slane %v6467_v0, %v6019_v21  ;;  %v2652_v36 = vrot.slane %v6467_v0, %v6022_v22 }
 0x4ba   : > { %v4207_v38 = vcombine.low %v4198_v27, %v4205_v20  ;;  %v2656_v40 = vrot.slane %v6467_v0, %v6025_v23  ;;  %v4125_v41 = vcombine.low %v2628_v14, %v2632_v24  ;;  %v4126_v42 = vcombine.low %v2636_v29, %v2640_v30 }
 0x4bb   : > { %4400 = vperm.xlu1 %5339, %v4075_v34   ;;  %v4214_v39 = vrot.slane %v4206_v61, %v6028_v25  ;;  %v4127_v63 = vcombine.low %v2644_v31, %v2648_v37  ;;  %v2692_v44 = vrot.slane %v1693_v28, %v6004_v15  ;;  %v2696_v46 = vrot.slane %v1693_v28, %v6007_v16 }
 0x4bc   : > { %v4221_v45 = vrot.slane %v4207_v38, %v6028_v25  ;;  %v4128_v48 = vcombine.low %v2652_v36, %v2656_v40  ;;  %v4135_v49 = vrot.slane %v4125_v41, %v6028_v25  ;;  %v4142_v50 = vrot.slane %v4126_v42, %v6028_v25  ;;  %v4663_v40 = vld [vmem:[%s6906_s9 + $0xe8] sm:$0xff]  ;;  %v4662_v42 = vld [vmem:[%s6906_s9 + $0xe0] sm:$0xff] }
 0x4bd   : > { %v4149_v52 = vrot.slane %v4127_v63, %v6028_v25  ;;  %v2700_v0 = vrot.slane %v1693_v28, %v6010_v17  ;;  %v2704_v53 = vrot.slane %v1693_v28, %v6013_v18  ;;  %v2708_v47 = vrot.slane %v1693_v28, %v6016_v19  ;;  %v4647_v41 = vld [vmem:[%s6906_s9 + $0x68] sm:$0xff]  ;;  %v4646_v63 = vld [vmem:[%s6906_s9 + $0x60] sm:$0xff] }
 0x4be   : > { %v4222_v54 = vcombine.low %v4214_v39, %v4221_v45  ;;  %v4156_v55 = vrot.slane %v4128_v48, %v6028_v25  ;;  %v4157_v56 = vcombine.low %v4135_v49, %v4142_v50  ;;  %v2712_v57 = vrot.slane %v1693_v28, %v6019_v21  ;;  %v4661_v48 = vld [vmem:[%s6906_s9 + $0xd8] sm:$0xff]  ;;  %v4660_v50 = vld [vmem:[%s6906_s9 + $0xd0] sm:$0xff] }
 0x4bf   : > { %v2716_v32 = vrot.slane %v1693_v28, %v6022_v22  ;;  %v2720_v59 = vrot.slane %v1693_v28, %v6025_v23  ;;  %v4223_v51 = vcombine.low %v2692_v44, %v2696_v46  ;;  %v4224_v1 = vcombine.low %v2700_v0, %v2704_v53  ;;  %v4649_v28 = vld [vmem:[%s6906_s9 + $0x78] sm:$0xff]  ;;  %v4659_v0 = vld [vmem:[%s6906_s9 + $0xc8] sm:$0xff] }
 0x4c0   : > { %4409 = vperm.xlu1 %5339, %v4222_v54   ;;  %v4158_v2 = vcombine.low %v4149_v52, %v4156_v55  ;;  %v4165_v3 = vrot.slane %v4157_v56, %v6028_v25  ;;  %v4225_v4 = vcombine.low %v2708_v47, %v2712_v57  ;;  %v2724_v43 = vrot.slane %v6495_v58, %v6004_v15  ;;  %v4645_v49 = vld [vmem:[%s6906_s9 + $0x58] sm:$0xff]  ;;  %v4644_v52 = vld [vmem:[%s6906_s9 + $0x50] sm:$0xff]  ;;  %v4643_v53 = vld [vmem:[%s6906_s9 + $0x48] sm:$0xff] }
 0x4c1   : > { %v4226_v33 = vcombine.low %v2716_v32, %v2720_v59  ;;  %v4233_v5 = vrot.slane %v4223_v51, %v6028_v25  ;;  %v4240_v6 = vrot.slane %v4224_v1, %v6028_v25  ;;  %v2728_v7 = vrot.slane %v6495_v58, %v6007_v16  ;;  %v4658_v47 = vld [vmem:[%s6906_s9 + $0xc0] sm:$0xff]  ;;  %v4657_v57 = vld [vmem:[%s6906_s9 + $0xb8] sm:$0xff]  ;;  %v4656_v59 = vld [vmem:[%s6906_s9 + $0xb0] sm:$0xff] }
 0x4c2   : > { %v4172_v8 = vrot.slane %v4158_v2, %v6028_v25  ;;  %v4247_v10 = vrot.slane %v4225_v4, %v6028_v25  ;;  %v2732_v62 = vrot.slane %v6495_v58, %v6010_v17  ;;  %v2736_v11 = vrot.slane %v6495_v58, %v6013_v18  ;;  %v4665_v18 = vld [vmem:[%s6906_s9 + $0xf8] sm:$0xff]  ;;  %v4642_v55 = vld [vmem:[%s6906_s9 + $0x40] sm:$0xff]  ;;  %v4640_v51 = vld [vmem:[%s6906_s9 + $0x30] sm:$0xff] }
 0x4c3   : > { %v4254_v35 = vrot.slane %v4226_v33, %v6028_v25  ;;  %v4255_v14 = vcombine.low %v4233_v5, %v4240_v6  ;;  %v2740_v24 = vrot.slane %v6495_v58, %v6016_v19  ;;  %v2744_v9 = vrot.slane %v6495_v58, %v6019_v21  ;;  %v4664_v19 = vld [vmem:[%s6906_s9 + $0xf0] sm:$0xff]  ;;  %5044 = vmatprep.subr.mxu0 %v4665_v18  ;;  %v4641_v32 = vld [vmem:[%s6906_s9 + $0x38] sm:$0xff]  ;;  %v4655_v1 = vld [vmem:[%s6906_s9 + $0xa8] sm:$0xff] }
 0x4c4   : > { %v4173_v26 = vcombine.low %v4165_v3, %v4172_v8  ;;  %v2748_v60 = vrot.slane %v6495_v58, %v6022_v22  ;;  %v2752_v27 = vrot.slane %v6495_v58, %v6025_v23  ;;  %v4272_v17 = vcombine.low %v2724_v43, %v2728_v7  ;;  %v4648_v23 = vld [vmem:[%s6906_s9 + $0x70] sm:$0xff]  ;;  %5045 = vmatpush3.msra.mxu0 %v4649_v28  ;;  %v4639_v2 = vld [vmem:[%s6906_s9 + $0x28] sm:$0xff]  ;;  %v4654_v3 = vld [vmem:[%s6906_s9 + $0xa0] sm:$0xff] }
 0x4c5   : > { %v4256_v21 = vcombine.low %v4247_v10, %v4254_v35  ;;  %v4263_v20 = vrot.slane %v4255_v14, %v6028_v25  ;;  %v4273_v22 = vcombine.low %v2732_v62, %v2736_v11  ;;  %v4274_v29 = vcombine.low %v2740_v24, %v2744_v9  ;;  %5046 = vmatprep.subr.mxu0 %v4664_v19  ;;  %v4638_v4 = vld [vmem:[%s6906_s9 + $0x20] sm:$0xff]  ;;  %v4653_v43 = vld [vmem:[%s6906_s9 + $0x98] sm:$0xff]  ;;  %v4652_v5 = vld [vmem:[%s6906_s9 + $0x90] sm:$0xff]  ;;  %v4323_v11 = vpop.permute.xlu1 %4322  ;;  %v4326_v35 = vpop.permute.xlu0 %4325 }
 0x4c6   : > { %4406 = vperm.xlu1 %5339, %v4173_v26   ;;  %v4275_v58 = vcombine.low %v2748_v60, %v2752_v27  ;;  %v4282_v30 = vrot.slane %v4272_v17, %v6028_v25  ;;  %5047 = vmatpush3.msra.mxu0 %v4648_v23  ;;  %v5420_v56 = vmov 0.0   ;;  %v4637_v33 = vld [vmem:[%s6906_s9 + $0x18] sm:$0xff]  ;;  %v4636_v6 = vld [vmem:[%s6906_s9 + $0x10] sm:$0xff]  ;;  %v4651_v7 = vld [vmem:[%s6906_s9 + $0x88] sm:$0xff] }
 0x4c7   : > { %v4270_v31 = vrot.slane %v4256_v21, %v6028_v25  ;;  %v4289_v34 = vrot.slane %v4273_v22, %v6028_v25  ;;  %v4296_v61 = vrot.slane %v4274_v29, %v6028_v25  ;;  %5048 = vmatprep.subr.mxu0 %v4663_v40  ;;  %466 = vst.msk [vmem:[#allocation2] sm:$0x3] %vm6624_vm5, %v5420_v56  ;;  %v4635_v8 = vld [vmem:[%s6906_s9 + $0x8] sm:$0xff]  ;;  %v4650_v10 = vld [vmem:[%s6906_s9 + $0x80] sm:$0xff] }
 0x4c8   : > { %v4303_v37 = vrot.slane %v4275_v58, %v6028_v25  ;;  %5049 = vmatpush3.msra.mxu0 %v4647_v41  ;;  %v4634_v62 = vld [vmem:[%s6906_s9] sm:$0xff]  ;;  %v6698_v58 = vand.u32 127, %v462_v13  ;;  %v4762_v54 = vld [vmem:[%s6908_s11 + $0x68] sm:$0xff] }
 0x4c9   : > { %v4271_v36 = vcombine.low %v4263_v20, %v4270_v31  ;;  %v4304_v38 = vcombine.low %v4282_v30, %v4289_v34  ;;  %5050 = vmatprep.subr.mxu0 %v4662_v42  ;;  %v4332_v24 = vpop.permute.xlu0 %4331 }
 0x4ca   : > { %v4305_v39 = vcombine.low %v4296_v61, %v4303_v37  ;;  %5051 = vmatpush3.msra.mxu0 %v4646_v63  ;;  %v4430_v34 = vadd.s32 4294967280, %v6698_v58  ;;  %v4423_v61 = vadd.s32 4294967288, %v6698_v58  ;;  %v4421_v37 = vsub.s32 %v6698_v58, %v6001_v12 }
 0x4cb   : > { %4412 = vperm.xlu1 %5339, %v4271_v36   ;;  %v4312_v44 = vrot.slane %v4304_v38, %v6028_v25  ;;  %5052 = vmatprep.subr.mxu0 %v4661_v48  ;;  %v4437_v36 = vadd.s32 4294967272, %v6698_v58  ;;  %v4444_v13 = vadd.s32 4294967264, %v6698_v58  ;;  %v4458_v48 = vadd.s32 4294967248, %v6698_v58 }
 0x4cc   : > { %v4319_v46 = vrot.slane %v4305_v39, %v6028_v25  ;;  %5053 = vmatpush3.msra.mxu0 %v4645_v49  ;;  %v4433_v40 = vsub.s32 %v4430_v34, %v6001_v12  ;;  %v4426_v42 = vsub.s32 %v4423_v61, %v6001_v12  ;;  %v4422_v39 = vrot.slane %v4323_v11, %v4421_v37 }
 0x4cd   : > { %5054 = vmatprep.subr.mxu0 %v4660_v50  ;;  %v4329_v26 = vpop.permute.xlu0 %4328  ;;  %v4440_v63 = vsub.s32 %v4437_v36, %v6001_v12  ;;  %v4500_v34 = vadd.s32 4294967200, %v6698_v58 }
 0x4ce   : > { %v4320_v45 = vcombine.low %v4312_v44, %v4319_v46  ;;  %5055 = vmatpush3.msra.mxu0 %v4644_v52  ;;  %v4451_v44 = vadd.s32 4294967256, %v6698_v58  ;;  %v4434_v46 = vrot.slane %v4329_v26, %v4433_v40  ;;  %v4427_v50 = vrot.slane %v4326_v35, %v4426_v42 }
 0x4cf   : > { %5056 = vmatprep.subr.mxu0 %v4659_v0 }
 0x4d0   : > { %4415 = vperm.xlu1 %5339, %v4320_v45   ;;  %5057 = vmatpush3.msra.mxu0 %v4643_v53  ;;  %v4447_v45 = vsub.s32 %v4444_v13, %v6001_v12 }
 0x4d1   : > { %5058 = vmatprep.subr.mxu0 %v4658_v47  ;;  %v6683_v27 = vpop.permute.xlu0 %4337 }
 0x4d2   : > { %5059 = vmatpush3.msra.mxu0 %v4642_v55  ;;  %v4429_v55 = vsel %vm4428_vm6, %v4427_v50, %v4422_v39  ;;  %v4493_v39 = vadd.s32 4294967208, %v6698_v58 }
 0x4d3   : > { %5060 = vmatprep.subr.mxu0 %v4657_v57  ;;  %v4441_v57 = vrot.slane %v4332_v24, %v4440_v63 }
 0x4d4   : > { %5061 = vmatpush3.msra.mxu0 %v4641_v32  ;;  %v4454_v32 = vsub.s32 %v4451_v44, %v6001_v12 }
 0x4d5   : > { %5062 = vmatprep.subr.mxu0 %v4656_v59  ;;  %v4335_v18 = vpop.permute.xlu0 %4334  ;;  %v4436_v59 = vsel %vm4435_vm7, %v4434_v46, %v4429_v55  ;;  %v4507_v46 = vadd.s32 4294967192, %v6698_v58 }
 0x4d6   : > { %5063 = vmatpush3.msra.mxu0 %v4640_v51  ;;  %v4448_v51 = vrot.slane %v4335_v18, %v4447_v45 }
 0x4d7   : > { %5064 = vmatprep.subr.mxu0 %v4655_v1  ;;  %v4461_v1 = vsub.s32 %v4458_v48, %v6001_v12  ;;  %v4514_v48 = vadd.s32 4294967184, %v6698_v58 }
 0x4d8   : > { %5065 = vmatpush3.msra.mxu0 %v4639_v2 }
 0x4d9   : > { %5066 = vmatprep.subr.mxu0 %v4654_v3  ;;  %v6687_v19 = vpop.permute.xlu0 %4343  ;;  %v4472_v3 = vadd.s32 4294967232, %v6698_v58 }
 0x4da   : > { %5067 = vmatpush3.msra.mxu0 %v4638_v4 }
 0x4db   : > { %5068 = vmatprep.subr.mxu0 %v4653_v43  ;;  %v4475_v24 = vsub.s32 %v4472_v3, %v6001_v12 }
 0x4dc   : > { %5069 = vmatpush3.msra.mxu0 %v4637_v33  ;;  %v4465_v33 = vadd.s32 4294967240, %v6698_v58 }
 0x4dd   : > { %5070 = vmatprep.subr.mxu0 %v4652_v5  ;;  %v4374_v14 = vpop.permute.xlu1 %4373  ;;  %v6689_v20 = vpop.permute.xlu0 %4340 }
 0x4de   : > { %5071 = vmatpush3.msra.mxu0 %v4636_v6  ;;  %v4535_v47 = vrot.slane %v4374_v14, %v4426_v42  ;;  %v4462_v35 = vrot.slane %v6689_v20, %v4461_v1 }
 0x4df   : > { %5072 = vmatprep.subr.mxu0 %v4651_v7  ;;  %v4455_v7 = vrot.slane %v6683_v27, %v4454_v32  ;;  %v4468_v27 = vsub.s32 %v4465_v33, %v6001_v12 }
 0x4e0   : > { %5073 = vmatpush3.msra.mxu0 %v4635_v8  ;;  %v4443_v8 = vsel %vm4442_vm8, %v4441_v57, %v4436_v59  ;;  %v4510_v59 = vsub.s32 %v4507_v46, %v6001_v12  ;;  %v4754_v46 = vld [vmem:[%s6908_s11 + $0x28] sm:$0xff] }
 0x4e1   : > { %5074 = vmatprep.subr.mxu0 %v4650_v10  ;;  %v6693_v29 = vpop.permute.xlu0 %4349  ;;  %v4479_v10 = vadd.s32 4294967224, %v6698_v58  ;;  %v4450_v11 = vsel %vm4449_vm9, %v4448_v51, %v4443_v8  ;;  %v4469_v42 = vrot.slane %v6687_v19, %v4468_v27  ;;  %v4517_v51 = vsub.s32 %v4514_v48, %v6001_v12  ;;  %v4751_v48 = vld [vmem:[%s6908_s11 + $0x10] sm:$0xff] }
 0x4e2   : > { %5075 = vmatpush3.msra.mxu0 %v4634_v62  ;;  %v4457_v18 = vsel %vm4456_vm10, %v4455_v7, %v4450_v11 }
 0x4e3   : > { %5244 = vmatprep.subr.mxu0 %v5420_v56  ;;  %v4464_v20 = vsel %vm4463_vm11, %v4462_v35, %v4457_v18 }
 0x4e5   : > { %v6700_v30 = vpop.permute.xlu0 %4346 }
 0x4e6   : > { %v4476_v36 = vrot.slane %v6700_v30, %v4475_v24  ;;  %v4471_v30 = vsel %vm4470_vm12, %v4469_v42, %v4464_v20  ;;  %v4758_v42 = vld [vmem:[%s6908_s11 + $0x48] sm:$0xff] }
 0x4e7   : > { %v4371_v9 = vpop.permute.xlu1 %4370 }
 0x4e8   : > { %v4531_v49 = vrot.slane %v4371_v9, %v4421_v37  ;;  %v4486_v9 = vadd.s32 4294967216, %v6698_v58 }
 0x4e9   : > { %v6709_v38 = vpop.permute.xlu0 %4355 }
 0x4ea   : > { %v4536_v2 = vsel %vm4428_vm6, %v4535_v47, %v4531_v49  ;;  %v4478_v49 = vsel %vm4477_vm13, %v4476_v36, %v4471_v30  ;;  %v4753_v30 = vld [vmem:[%s6908_s11 + $0x20] sm:$0xff]  ;;  %vm4836_vm6 = vcmask 253952  }
 0x4ed   : > { %v6720_v52 = vpop.permute.xlu0 %4352 }
 0x4f2   : > { %v4380_v60 = vpop.permute.xlu1 %4379 }
 0x4f3   : > { %v4545_v5 = vrot.slane %v4380_v60, %v4440_v63 }
 0x4f7   : > { %v6733_v62 = vpop.permute.xlu0 %4361 }
 0x4fc   : > { %v4377_v17 = vpop.permute.xlu1 %4376 }
 0x4fd   : > { %v4540_v0 = vrot.slane %v4377_v17, %v4433_v40 }
 0x4ff   : > { %v4541_v4 = vsel %vm4435_vm7, %v4540_v0, %v4536_v2 }
 0x500   : > { %v4546_v14 = vsel %vm4442_vm8, %v4545_v5, %v4541_v4 }
 0x502   : > { %v4359_v40 = vpop.permute.xlu0 %4358 }
 0x507   : > { %v6685_v28 = vpop.permute.xlu1 %4385 }
 0x508   : > { %v4555_v17 = vrot.slane %v6685_v28, %v4454_v32 }
 0x50c   : > { %v4383_v21 = vpop.permute.xlu1 %4382 }
 0x50d   : > { %v4550_v43 = vrot.slane %v4383_v21, %v4447_v45  ;;  %v4482_v21 = vsub.s32 %v4479_v10, %v6001_v12  ;;  %v4503_v45 = vsub.s32 %v4500_v34, %v6001_v12  ;;  %v1599_v34 = vld [vmem:[#allocation2] sm:$0x3] }
 0x50f   : > { %v4551_v26 = vsel %vm4449_vm9, %v4550_v43, %v4546_v14  ;;  %v4483_v44 = vrot.slane %v6693_v29, %v4482_v21  ;;  %v4521_v29 = vadd.s32 4294967176, %v6698_v58  ;;  %v4504_v2 = vrot.slane %v4359_v40, %v4503_v45 }
 0x510   : > { %v4556_v61 = vsel %vm4456_vm10, %v4555_v17, %v4551_v26  ;;  %v4511_v14 = vrot.slane %v6733_v62, %v4510_v59 }
 0x511   : > { %v4365_v50 = vpop.permute.xlu0 %4364  ;;  %v4485_v32 = vsel %vm4484_vm14, %v4483_v44, %v4478_v49  ;;  %v4524_v58 = vsub.s32 %v4521_v29, %v6001_v12  ;;  %v4755_v44 = vld [vmem:[%s6908_s11 + $0x30] sm:$0xff]  ;;  %v4749_v49 = vld [vmem:[%s6908_s11] sm:$0xff] }
 0x512   : > { %v4518_v10 = vrot.slane %v4365_v50, %v4517_v51  ;;  %v4666_v50 = vld [vmem:[%s6907_s10] sm:$0x1] }
 0x517   : > { %v6691_v22 = vpop.permute.xlu1 %4391 }
 0x518   : > { %v4565_v63 = vrot.slane %v6691_v22, %v4468_v27  ;;  %v4496_v22 = vsub.s32 %v4493_v39, %v6001_v12  ;;  %v4757_v39 = vld [vmem:[%s6908_s11 + $0x40] sm:$0xff] }
 0x51a   : > { %v4497_v43 = vrot.slane %v6709_v38, %v4496_v22 }
 0x51c   : > { %v4368_v5 = vpop.permute.xlu0 %4367 }
 0x51d   : > { %v4525_v38 = vrot.slane %v4368_v5, %v4524_v58 }
 0x521   : > { %v6695_v23 = vpop.permute.xlu1 %4388 }
 0x522   : > { %v4560_v60 = vrot.slane %v6695_v23, %v4461_v1  ;;  %v4489_v23 = vsub.s32 %v4486_v9, %v6001_v12 }
 0x524   : > { %v4561_v13 = vsel %vm4463_vm11, %v4560_v60, %v4556_v61  ;;  %v4490_v19 = vrot.slane %v6720_v52, %v4489_v23 }
 0x526   : > { %v6702_v31 = vpop.permute.xlu1 %4397  ;;  %v4492_v1 = vsel %vm4491_vm15, %v4490_v19, %v4485_v32 }
 0x527   : > { %v4575_v55 = vrot.slane %v6702_v31, %v4482_v21 }
 0x52c   : > { %v6713_v41 = vpop.permute.xlu1 %4394 }
 0x52d   : > { %v4570_v28 = vrot.slane %v6713_v41, %v4475_v24  ;;  %v4566_v41 = vsel %vm4470_vm12, %v4565_v63, %v4561_v13  ;;  %v4764_v13 = vld [vmem:[%s6908_s11 + $0x78] sm:$0xff] }
 0x52e   : > { %v4756_v63 = vld [vmem:[%s6908_s11 + $0x38] sm:$0xff] }
 0x52f   : > { %v4571_v0 = vsel %vm4477_vm13, %v4570_v28, %v4566_v41  ;;  %v4759_v28 = vld [vmem:[%s6908_s11 + $0x50] sm:$0xff]  ;;  %v4750_v41 = vld [vmem:[%s6908_s11 + $0x8] sm:$0xff] }
 0x530   : > { %v4576_v52 = vsel %vm4484_vm14, %v4575_v55, %v4571_v0  ;;  %v4765_v55 = vld [vmem:[%s6909_s12] sm:$0x1] }
 0x531   : > { %v6722_v53 = vpop.permute.xlu1 %4403 }
 0x532   : > { %v4585_v31 = vrot.slane %v6722_v53, %v4496_v22 }
 0x536   : > { %v4401_v6 = vpop.permute.xlu1 %4400 }
 0x537   : > { %v4580_v47 = vrot.slane %v4401_v6, %v4489_v23  ;;  %v4499_v6 = vsel %vm4498_vm0, %v4497_v43, %v4492_v1 }
 0x538   : > { %v4506_v8 = vsel %vm4505_vm1, %v4504_v2, %v4499_v6 }
 0x539   : > { %v4581_v3 = vsel %vm4491_vm15, %v4580_v47, %v4576_v52  ;;  %v4513_v9 = vsel %vm4512_vm2, %v4511_v14, %v4506_v8 }
 0x53a   : > { %v4586_v7 = vsel %vm4498_vm0, %v4585_v31, %v4581_v3  ;;  %v4520_v60 = vsel %vm4519_vm3, %v4518_v10, %v4513_v9 }
 0x53b   : > { %v4410_v37 = vpop.permute.xlu1 %4409  ;;  %v4527_v17 = vsel %vm4526_vm4, %v4525_v38, %v4520_v60 }
 0x53c   : > { %v4595_v24 = vrot.slane %v4410_v37, %v4510_v59 }
 0x541   : > { %v4407_v57 = vpop.permute.xlu1 %4406 }
 0x542   : > { %v4590_v4 = vrot.slane %v4407_v57, %v4503_v45  ;;  %v4752_v45 = vld [vmem:[%s6908_s11 + $0x18] sm:$0xff] }
 0x544   : > { %v4591_v11 = vsel %vm4505_vm1, %v4590_v4, %v4586_v7 }
 0x545   : > { %v4596_v53 = vsel %vm4512_vm2, %v4595_v24, %v4591_v11 }
 0x546   : > { %v4413_v33 = vpop.permute.xlu1 %4412 }
 0x547   : > { %v4600_v35 = vrot.slane %v4413_v33, %v4517_v51 }
 0x549   : > { %v4601_v27 = vsel %vm4519_vm3, %v4600_v35, %v4596_v53 }
 0x54b   : > { %v4416_v12 = vpop.permute.xlu1 %4415 }
 0x54c   : > { %v4605_v26 = vrot.slane %v4416_v12, %v4524_v58 }
 0x54e   : > { %v4606_v18 = vsel %vm4526_vm4, %v4605_v26, %v4601_v27 }
 0x54f   : > { %v4607_v21 = vcombine.low %v4527_v17, %v4606_v18 }
 0x551   : > { %v4614_v20 = vrot.slane %v4607_v21, %v6028_v25 }
 0x553   : > { %v4621_v61 = vrot.slane %v4614_v20, %v6028_v25  ;;  %v4763_v25 = vld [vmem:[%s6908_s11 + $0x70] sm:$0xff] }
 0x555   : > { %v4623_v36 = vadd.f32 %v4621_v61, %v1599_v34 }
 0x557   : > { %4628 = vst.msk [vmem:[#allocation2] sm:$0x3] %vm6624_vm5, %v4623_v36  ;;  %vm5421_vm5 = vmmov 0  }
 0x55e   : > { %v4632_v62 = vld [vmem:[#allocation2] sm:$0x3] }
 0x55f   : > { %v4633_v37 = vmul.f32 0.0625, %v4632_v62 }
 0x561   : > { %v4671_v23 = vrot.slane %v4633_v37, %v6004_v15  ;;  %v4675_v40 = vrot.slane %v4633_v37, %v6007_v16  ;;  %v4761_v15 = vld [vmem:[%s6908_s11 + $0x60] sm:$0xff]  ;;  %v4760_v16 = vld [vmem:[%s6908_s11 + $0x58] sm:$0xff] }
 0x563   : > { %4742 = vmatprep.mubr.f32.mxu0 %v4675_v40 }
 0x564   : > { %4743 = vmatmul.mubr.f32.vlgmr.msra.gmra.mxu0 %v4671_v23 }
 0x565   : > { %5245 = vmatpush3.msra.mxu0 %v4764_v13  ;;  %5276 = vmatprep.mubr.msk.f32.mxu0 %vm5421_vm5, %v5420_v56 }
 0x566   : > { %5246 = vmatprep.subr.mxu0 %v5420_v56 }
 0x567   : > { %5247 = vmatpush3.msra.mxu0 %v4763_v25 }
 0x568   : > { %5248 = vmatprep.subr.mxu0 %v5420_v56 }
 0x569   : > { %5249 = vmatpush3.msra.mxu0 %v4762_v54 }
 0x56a   : > { %5250 = vmatprep.subr.mxu0 %v5420_v56 }
 0x56b   : > { %5251 = vmatpush3.msra.mxu0 %v4761_v15 }
 0x56c   : > { %5252 = vmatprep.subr.mxu0 %v5420_v56 }
 0x56d   : > { %5253 = vmatpush3.msra.mxu0 %v4760_v16 }
 0x56e   : > { %5254 = vmatprep.subr.mxu0 %v5420_v56 }
 0x56f   : > { %5255 = vmatpush3.msra.mxu0 %v4759_v28 }
 0x570   : > { %5256 = vmatprep.subr.mxu0 %v5420_v56 }
 0x571   : > { %5257 = vmatpush3.msra.mxu0 %v4758_v42 }
 0x572   : > { %5258 = vmatprep.subr.mxu0 %v5420_v56 }
 0x573   : > { %5259 = vmatpush3.msra.mxu0 %v4757_v39 }
 0x574   : > { %5260 = vmatprep.subr.mxu0 %v5420_v56 }
 0x575   : > { %5261 = vmatpush3.msra.mxu0 %v4756_v63 }
 0x576   : > { %5262 = vmatprep.subr.mxu0 %v5420_v56 }
 0x577   : > { %5263 = vmatpush3.msra.mxu0 %v4755_v44 }
 0x578   : > { %5264 = vmatprep.subr.mxu0 %v5420_v56 }
 0x579   : > { %5265 = vmatpush3.msra.mxu0 %v4754_v46 }
 0x57a   : > { %5266 = vmatprep.subr.mxu0 %v5420_v56 }
 0x57b   : > { %5267 = vmatpush3.msra.mxu0 %v4753_v30 }
 0x57c   : > { %5268 = vmatprep.subr.mxu0 %v5420_v56 }
 0x57d   : > { %5269 = vmatpush3.msra.mxu0 %v4752_v45 }
 0x57e   : > { %5270 = vmatprep.subr.mxu0 %v5420_v56 }
 0x57f   : > { %5271 = vmatpush3.msra.mxu0 %v4751_v48 }
 0x580   : > { %5272 = vmatprep.subr.mxu0 %v5420_v56 }
 0x581   : > { %5273 = vmatpush3.msra.mxu0 %v4750_v41 }
 0x582   : > { %5274 = vmatprep.subr.mxu0 %v5420_v56 }
 0x583   : > { %5275 = vmatpush3.msra.mxu0 %v4749_v49 }
 0x624   : > { %v5076_v19 = vpop.f32.mrf.mxu0 }
 0x626   : > { %v5077_v0 = vpop.f32.mrf.mxu0 }
 0x627   : > { %v5078_v47 = vadd.f32 %v5077_v0, %v5076_v19 }
 0x629   : > { %v4745_v22 = vadd.f32 %v5078_v47, %v4666_v50 }
 0x62b   : > { %v4748_v29 = vmax.f32 %v4745_v22, 0.0 }
 0x62d   : > { %5277 = vmatmul.mubr.f32.vlgmr.msra.gmra.mxu0 %v4748_v29 }
 0x6ed   : > { %v4832_v56 = vpop.f32.mrf.mxu0 }
 0x6ee   : > { %v4833_v57 = vadd.f32 %v4832_v56, %v4765_v55 }
 0x6ef   : > { %v5278_v32 = vpop.f32.mrf.mxu0 }
 0x6f0   : > { %4837 = vst.msk [vmem:[%s450_s22] sm:$0x1] %vm4836_vm6, %v4833_v57 }
 0x6f1   : > { %5353 = shalt.err (!%p5350_p5)
}
 0x6f2   : > { %s5354_s19 = scalar_lea.hbm %s6857_s17, 16  ;;  %s5358_s29 = scalar_lea.hbm %s6910_s13, 32 }
 0x6f3   : > { %p5355_p6 = scmp.ne.s32.totalorder %s6857_s17, %s5354_s19  ;;  %p5359_p10 = scmp.lt.s32.totalorder %s6857_s17, %s6910_s13 }
 0x6f4   : > { %p5360_p11 = scmp.lt.s32.totalorder %s5358_s29, %s5354_s19 }
 0x6f5   : > { %p5356_p7 = pnand %p5355_p6, %p5533_p4 }
 0x6f6   : > { %p5361_p12 = por %p5360_p11, %p5359_p10 }
 0x6f7   : > { %p5357_p9 = pneg %p5356_p7 }
 0x6f9   : > { %p5362_p13 = pnand %p5361_p12, %p5357_p9 }
 0x6fb   : > { %5365 = shalt.err (!%p5362_p13)
}
 0x6fc   : > { %5279 = dma.vmem_to_hbm [thread:$0]  (%p5533_p4), %s4852_s23, 16, %s6857_s17, %s4839_s21  }
 0x6fd PF: > { %p5285_p0 = scmp.ge.s32.totalorder %s5416_s30, 2  ;;  %s4863_s27 = sand.u32 1, %s5396_s25  }
 0x6fe   : > { %s4864_s14 = scalar_lea.sflag [#allocation4], %s4863_s27 }
 0x6ff   : > { %p5282_p1 = pnand %p5285_p0, %p5540_p8 }
 0x701   : > { %p5283_p2 = pneg %p5282_p1 }
 0x703   : > { %5391 = dma.done.wait (%p5283_p2), %s4864_s14, 16  }
 0x704   : > { %5393 = vsyncadd (%p5283_p2), %s4864_s14, 4294967280  ;;  %s26_s30 = sadd.s32 1, %s5416_s30   ;;  %s6922_s15 = sld [smem:[#allocation6_spill]] }
 0x705   : > { %p23_p3 = scmp.ge.s32.totalorder %s26_s30, 4   ;;  %s6923_s27 = sld [smem:[#allocation9_spill]] }
 0x706   : > { %s6924_s28 = sld [smem:[#allocation7_spill]]  ;;  %s6926_s25 = smov %s5400_s26 }
 0x707   : > { %s6925_s29 = sld [smem:[#allocation8_spill]]  ;;  %25 = sbr.rel (!%p23_p3) target bundleno = 4 (0x4), region = 115 }
 0x70a   : > { %s6927_s26 = smov %s6922_s15 }
 0x70c   :  { %4868 = vsyncpa [#allocation4], 1 }
 0x70d   :  { %4870 = vsyncpa [#allocation4 + $0x1], 1 }

</bundles_post_ra>
